<compile_context>
chip_gen: v5e
topology: v5e:2x2
jax: 0.10.0
libtpu: 0.0.40
codegen_flags: <defaults>
</compile_context>

<pallas_src>
import jax
import jax.numpy as jnp
from jax.experimental import pallas as pl
from jax.experimental.pallas import tpu as pltpu

# ---------------------------------------------------------------------------
# Model configuration (small shapes)
# ---------------------------------------------------------------------------
HIDDEN_CHANNELS = 8
OUTPUT_SHAPE = [4, 16, 16]          # (C, H, W)
LATENT_DIMS = 32
BATCH = 2


# ---------------------------------------------------------------------------
# Fused Pallas kernel: fc -> convT2(+ReLU) -> convT1, and softplus(pre_sigma)
# ---------------------------------------------------------------------------
def _decoder_kernel(z_ref, w1_ref, b1_ref, m2_ref, b2_ref, m1_ref, b1c_ref,
                    ps_ref, mu_ref, sp_ref):
    # fc:      (B, L) @ (L, 256)    + b -> (B, 256)   [NCHW-flat (B, 16, 4, 4)]
    x = jnp.dot(z_ref[...], w1_ref[...],
                preferred_element_type=jnp.float32) + b1_ref[...]
    # convT2:  (B, 256) @ (256, 512) + b -> (B, 512)  [NCHW-flat (B, 8, 8, 8)]
    h = jnp.dot(x, m2_ref[...], preferred_element_type=jnp.float32) + b2_ref[...]
    h = jnp.maximum(h, 0.0)                                   # ReLU
    # convT1:  (B, 512) @ (512, 1024) + b -> (B, 1024) [NCHW-flat (B, 4, 16, 16)]
    mu_ref[...] = (jnp.dot(h, m1_ref[...], preferred_element_type=jnp.float32)
                   + b1c_ref[...])
    # softplus(pre_sigma) on a lane-dense (8, 128) = one-vreg view
    # (matches torch.nn.functional.softplus: beta=1, threshold=20).
    p = ps_ref[...]
    sp_ref[...] = jnp.where(p > 20.0, p,
                            jnp.log1p(jnp.exp(jnp.minimum(p, 20.0))))


# ---------------------------------------------------------------------------
# One-time parameter packing (outside the jitted forward)
# ---------------------------------------------------------------------------
def _convt_dense_matrix(w_t, hi, wi):
    """Dense M with  y_flat = x_flat @ M  ==  ConvTranspose2d(k=4, s=2, p=1)(x)
    (bias excluded) on NCHW-flattened x.  w_t is the PyTorch weight layout
    (Cin, Cout, kH, kW).  Built once at pack time; exact (0/1 indicators)."""
    cin, cout, kh, kw = w_t.shape
    ho, wo = 2 * hi, 2 * wi
    # PyTorch transposed conv:  oh = 2*ih - 1 + kh  (out-of-range rows cropped).
    ah = (jnp.arange(ho)[None, :, None]
          == 2 * jnp.arange(hi)[:, None, None] - 1
          + jnp.arange(kh)[None, None, :]).astype(w_t.dtype)
    aw = (jnp.arange(wo)[None, :, None]
          == 2 * jnp.arange(wi)[:, None, None] - 1
          + jnp.arange(kw)[None, None, :]).astype(w_t.dtype)
    m6 = jnp.einsum("cdab,hxa,wyb->chwdxy", w_t, ah, aw,
                    precision=jax.lax.Precision.HIGHEST)
    return m6.reshape(cin * hi * wi, cout * ho * wo)


def pack_params(params):
    C, H, W = OUTPUT_SHAPE
    n = C * H * W
    assert n % 128 == 0
    m2 = _convt_dense_matrix(params["conv2_w"], H // 4, W // 4)   # (256, 512)
    m1 = _convt_dense_matrix(params["conv1_w"], H // 2, W // 2)   # (512, 1024)
    return {
        "fc_w": params["fc_w"].T.astype(jnp.float32),             # (32, 256)
        "fc_b": params["fc_b"].reshape(1, -1).astype(jnp.float32),
        "m2": m2.astype(jnp.float32),
        "b2": jnp.repeat(params["conv2_b"],
                         (H // 2) * (W // 2)).reshape(1, -1).astype(jnp.float32),
        "m1": m1.astype(jnp.float32),
        "b1c": jnp.repeat(params["conv1_b"], H * W).reshape(1, -1).astype(jnp.float32),
        "pre_sigma": params["pre_sigma"].reshape(n // 128, 128).astype(jnp.float32),
    }


# ---------------------------------------------------------------------------
# Forward pass (single fused pallas_call; NCHW views are free reshapes)
# ---------------------------------------------------------------------------
def decoder_forward(z, packed):
    B = z.shape[0]
    C, H, W = OUTPUT_SHAPE
    vmem = pl.BlockSpec(memory_space=pltpu.MemorySpace.VMEM)
    mu_flat, sp = pl.pallas_call(
        _decoder_kernel,
        out_shape=(
            jax.ShapeDtypeStruct((B, C * H * W), jnp.float32),     # lane-dense
            jax.ShapeDtypeStruct(packed["pre_sigma"].shape, jnp.float32),
        ),
        in_specs=[vmem] * 8,
        out_specs=(vmem, vmem),
    )(z, packed["fc_w"], packed["fc_b"], packed["m2"], packed["b2"],
      packed["m1"], packed["b1c"], packed["pre_sigma"])

    x_mu = mu_flat.reshape(B, C, H, W)
    sigma = jnp.broadcast_to(sp.reshape(C, H, W)[None], (B, C, H, W))
    return x_mu, sigma


# ---------------------------------------------------------------------------
# Pure-JAX reference (for correctness check)
# ---------------------------------------------------------------------------
def reference_forward(z, params):
    B = z.shape[0]
    hc = HIDDEN_CHANNELS
    C, H, W = OUTPUT_SHAPE

    x = z @ params["fc_w"].T + params["fc_b"]
    x = x.reshape(B, hc * 2, H // 4, W // 4)

    def ct(x, w_t, b):
        w_eq = jnp.transpose(w_t[:, :, ::-1, ::-1], (1, 0, 2, 3))  # (Cout,Cin,kh,kw)
        y = jax.lax.conv_general_dilated(
            x, w_eq, window_strides=(1, 1), padding=[(2, 2), (2, 2)],
            lhs_dilation=(2, 2), dimension_numbers=("NCHW", "OIHW", "NCHW"))
        return y + b.reshape(1, -1, 1, 1)

    x = jax.nn.relu(ct(x, params["conv2_w"], params["conv2_b"]))
    x_mu = ct(x, params["conv1_w"], params["conv1_b"])
    sigma = jnp.broadcast_to(jax.nn.softplus(params["pre_sigma"])[None],
                             (B, C, H, W))
    return x_mu, sigma


# ---------------------------------------------------------------------------
# Deterministic parameter init (synthetic, not a checkpoint)
# ---------------------------------------------------------------------------
def init_params(key):
    hc = HIDDEN_CHANNELS
    C, H, W = OUTPUT_SHAPE
    fc_out = hc * 2 * H // 4 * W // 4   # same left-to-right arithmetic as PyTorch
    k_fc_w, k_fc_b, k_c2w, k_c2b, k_c1w, k_c1b = jax.random.split(key, 6)
    return {
        "fc_w": 0.05 * jax.random.normal(k_fc_w, (fc_out, LATENT_DIMS), jnp.float32),
        "fc_b": 0.05 * jax.random.normal(k_fc_b, (fc_out,), jnp.float32),
        "conv2_w": 0.05 * jax.random.normal(k_c2w, (hc * 2, hc, 4, 4), jnp.float32),
        "conv2_b": 0.05 * jax.random.normal(k_c2b, (hc,), jnp.float32),
        "conv1_w": 0.05 * jax.random.normal(k_c1w, (hc, C, 4, 4), jnp.float32),
        "conv1_b": 0.05 * jax.random.normal(k_c1b, (C,), jnp.float32),
        "pre_sigma": jnp.zeros((C, H, W), jnp.float32),  # nn.Parameter(torch.zeros)
    }


if __name__ == "__main__":
    key = jax.random.PRNGKey(0)
    k_params, k_z = jax.random.split(key)
    params = init_params(k_params)
    packed = pack_params(params)          # one-time weight repacking
    z = jax.random.normal(k_z, (BATCH, LATENT_DIMS), jnp.float32)

    fwd = jax.jit(decoder_forward)
    x_mu, sigma = fwd(z, packed)
    jax.block_until_ready((x_mu, sigma))

    ref_mu, ref_sigma = reference_forward(z, params)
    assert x_mu.shape == (BATCH, *OUTPUT_SHAPE)
    assert sigma.shape == (BATCH, *OUTPUT_SHAPE)
    assert jnp.allclose(x_mu, ref_mu, atol=2e-4, rtol=2e-4), \
        float(jnp.max(jnp.abs(x_mu - ref_mu)))
    assert jnp.allclose(sigma, ref_sigma, atol=1e-5, rtol=1e-5)

    print("KERNEL_OK")
</pallas_src>

<mosaic_0001>
module attributes {stable_mosaic.version = 11 : i64} {
  func.func @_decoder_kernel(%arg0: memref<2x32xf32, #tpu.memory_space<vmem>>, %arg1: memref<32x256xf32, #tpu.memory_space<vmem>>, %arg2: memref<1x256xf32, #tpu.memory_space<vmem>>, %arg3: memref<256x512xf32, #tpu.memory_space<vmem>>, %arg4: memref<1x512xf32, #tpu.memory_space<vmem>>, %arg5: memref<512x1024xf32, #tpu.memory_space<vmem>>, %arg6: memref<1x1024xf32, #tpu.memory_space<vmem>>, %arg7: memref<8x128xf32, #tpu.memory_space<vmem>>, %arg8: memref<2x1024xf32, #tpu.memory_space<vmem>>, %arg9: memref<8x128xf32, #tpu.memory_space<vmem>>) attributes {dimension_semantics = [], scalar_prefetch = 0 : i64, scratch_operands = 0 : i64, tpu.core_type = #tpu.core_type<tc>} {
    %c0 = arith.constant 0 : index
    %c0_0 = arith.constant 0 : index
    %0 = vector.load %arg0[%c0, %c0_0] : memref<2x32xf32, #tpu.memory_space<vmem>>, vector<2x32xf32>
    %c0_1 = arith.constant 0 : index
    %c0_2 = arith.constant 0 : index
    %1 = vector.load %arg1[%c0_1, %c0_2] : memref<32x256xf32, #tpu.memory_space<vmem>>, vector<32x256xf32>
    %cst = arith.constant dense<0.000000e+00> : vector<2x256xf32>
    %2 = tpu.matmul %0, %1, %cst {dimension_numbers = #tpu.dot_dimension_numbers<[1], [0], [0], [1], [0, 0, 1, 1], [], []>} : vector<2x32xf32>, vector<32x256xf32>, vector<2x256xf32> -> vector<2x256xf32>
    %c0_3 = arith.constant 0 : index
    %c0_4 = arith.constant 0 : index
    %3 = vector.load %arg2[%c0_3, %c0_4] : memref<1x256xf32, #tpu.memory_space<vmem>>, vector<1x256xf32>
    %4 = vector.broadcast %3 : vector<1x256xf32> to vector<2x256xf32>
    %5 = arith.addf %2, %4 : vector<2x256xf32>
    %c0_5 = arith.constant 0 : index
    %c0_6 = arith.constant 0 : index
    %6 = vector.load %arg3[%c0_5, %c0_6] : memref<256x512xf32, #tpu.memory_space<vmem>>, vector<256x512xf32>
    %cst_7 = arith.constant dense<0.000000e+00> : vector<2x512xf32>
    %7 = tpu.matmul %5, %6, %cst_7 {dimension_numbers = #tpu.dot_dimension_numbers<[1], [0], [0], [1], [0, 0, 1, 1], [], []>} : vector<2x256xf32>, vector<256x512xf32>, vector<2x512xf32> -> vector<2x512xf32>
    %c0_8 = arith.constant 0 : index
    %c0_9 = arith.constant 0 : index
    %8 = vector.load %arg4[%c0_8, %c0_9] : memref<1x512xf32, #tpu.memory_space<vmem>>, vector<1x512xf32>
    %9 = vector.broadcast %8 : vector<1x512xf32> to vector<2x512xf32>
    %10 = arith.addf %7, %9 : vector<2x512xf32>
    %cst_10 = arith.constant 0.000000e+00 : f32
    %11 = vector.broadcast %cst_10 : f32 to vector<2x512xf32>
    %12 = arith.maximumf %10, %11 : vector<2x512xf32>
    %c0_11 = arith.constant 0 : index
    %c0_12 = arith.constant 0 : index
    %13 = vector.load %arg5[%c0_11, %c0_12] : memref<512x1024xf32, #tpu.memory_space<vmem>>, vector<512x1024xf32>
    %cst_13 = arith.constant dense<0.000000e+00> : vector<2x1024xf32>
    %14 = tpu.matmul %12, %13, %cst_13 {dimension_numbers = #tpu.dot_dimension_numbers<[1], [0], [0], [1], [0, 0, 1, 1], [], []>} : vector<2x512xf32>, vector<512x1024xf32>, vector<2x1024xf32> -> vector<2x1024xf32>
    %c0_14 = arith.constant 0 : index
    %c0_15 = arith.constant 0 : index
    %15 = vector.load %arg6[%c0_14, %c0_15] : memref<1x1024xf32, #tpu.memory_space<vmem>>, vector<1x1024xf32>
    %16 = vector.broadcast %15 : vector<1x1024xf32> to vector<2x1024xf32>
    %17 = arith.addf %14, %16 : vector<2x1024xf32>
    %c0_16 = arith.constant 0 : index
    %c0_17 = arith.constant 0 : index
    %18 = vector.load %arg8[%c0_16, %c0_17] : memref<2x1024xf32, #tpu.memory_space<vmem>>, vector<2x1024xf32>
    tpu.vector_store %arg8[%c0_16, %c0_17], %17 {strides = array<i32>} : memref<2x1024xf32, #tpu.memory_space<vmem>>, vector<2x1024xf32>,
    %c0_18 = arith.constant 0 : index
    %c0_19 = arith.constant 0 : index
    %19 = vector.load %arg7[%c0_18, %c0_19] : memref<8x128xf32, #tpu.memory_space<vmem>>, vector<8x128xf32>
    %cst_20 = arith.constant 2.000000e+01 : f32
    %20 = vector.broadcast %cst_20 : f32 to vector<8x128xf32>
    %21 = arith.cmpf ogt, %19, %20 : vector<8x128xf32>
    %cst_21 = arith.constant 2.000000e+01 : f32
    %22 = vector.broadcast %cst_21 : f32 to vector<8x128xf32>
    %23 = arith.minimumf %19, %22 : vector<8x128xf32>
    %24 = math.exp %23 : vector<8x128xf32>
    %25 = math.log1p %24 : vector<8x128xf32>
    %26 = arith.select %21, %19, %25 : vector<8x128xi1>, vector<8x128xf32>
    %c0_22 = arith.constant 0 : index
    %c0_23 = arith.constant 0 : index
    %27 = vector.load %arg9[%c0_22, %c0_23] : memref<8x128xf32, #tpu.memory_space<vmem>>, vector<8x128xf32>
    tpu.vector_store %arg9[%c0_22, %c0_23], %26 {strides = array<i32>} : memref<8x128xf32, #tpu.memory_space<vmem>>, vector<8x128xf32>,
    return
  }
}

</mosaic_0001>

<bundles_post_ra>
// kernel: decoder_forward.1
= control target key start
LH: loop header
LB: loop body
LE: loop exit
PB: predicated region body
PF: predicated region fallthrough
CT: control target
= control target key end

     0   :  { %15 = vsyncpa [#allocation3], 0  ;;  %s2134_s0 = inlined_call_operand.hbm [shape: f32[2,32], index: 0, kind: input, shape index: {}]   ;;  %s2135_s1 = inlined_call_operand.hbm [shape: f32[32,256], index: 1, kind: input, shape index: {}]   ;;  %s2136_s2 = inlined_call_operand.hbm [shape: f32[1,256], index: 2, kind: input, shape index: {}]   ;;  %s2137_s3 = inlined_call_operand.hbm [shape: f32[256,512], index: 3, kind: input, shape index: {}]   ;;  %s2138_s4 = inlined_call_operand.hbm [shape: f32[1,512], index: 4, kind: input, shape index: {}]   ;;  %s2139_s5 = inlined_call_operand.hbm [shape: f32[512,1024], index: 5, kind: input, shape index: {}]   ;;  %s2140_s6 = inlined_call_operand.hbm [shape: f32[1,1024], index: 6, kind: input, shape index: {}]   ;;  %s2141_s7 = inlined_call_operand.hbm [shape: f32[8,128], index: 7, kind: input, shape index: {}]   ;;  %s2142_s8 = inlined_call_operand.vmem [shape: f32[2,1024], index: 8, kind: output, shape index: {0}]   ;;  %s2143_s9 = inlined_call_operand.vmem [shape: f32[8,128], index: 9, kind: output, shape index: {1}]  }
   0x1   :  { %16 = vsyncpa [#allocation5], 0 }
   0x2   :  { %17 = vsyncpa [#allocation8], 0 }
   0x3   :  { %18 = vsyncpa [#allocation11], 0  ;;  %s35_s11 = sshll.u32 %s2135_s1, 4  ;;  %s36_s11 = int_to_ptr.hbm [resolvable:$true] %s35_s11 }
   0x4   :  { %19 = vsyncpa [#allocation14], 0  ;;  %s1955_s12 = smov [#allocation4]   ;;  %s59_s16 = sshll.u32 %s2137_s3, 4  ;;  %s60_s16 = int_to_ptr.hbm [resolvable:$true] %s59_s16 }
   0x5   :  { %s37_s13 = sshll.u32 %s1955_s12, 4  ;;  %s1956_s17 = smov 256   ;;  %s38_s13 = int_to_ptr.vmem [resolvable:$true] %s37_s13 }
   0x6   :  { %s1957_s18 = smov 16   ;;  %s1958_s19 = smov [#allocation7]  }
   0x7   :  { %43 = dma.hbm_to_vmem [thread:$0]  %s36_s11, 1024, %s38_s13, [#allocation5], %s1956_s17, %s1956_s17, %s1957_s18  }
   0x8   :  { %s61_s20 = sshll.u32 %s1958_s19, 4  ;;  %s1959_s21 = smov 512   ;;  %s62_s20 = int_to_ptr.vmem [resolvable:$true] %s61_s20 }
   0x9   :  { %s1960_s22 = smov 32   ;;  %s83_s24 = sshll.u32 %s2139_s5, 4  ;;  %s84_s24 = int_to_ptr.hbm [resolvable:$true] %s83_s24 }
   0xa   :  { %67 = dma.hbm_to_vmem [thread:$0]  %s60_s16, 16384, %s62_s20, [#allocation8], %s1959_s21, %s1959_s21, %s1960_s22  }
   0xb   :  { %s1961_s25 = smov [#allocation10]   ;;  %s25_s28 = sshll.u32 %s2134_s0, 4  ;;  %s26_s28 = int_to_ptr.hbm [resolvable:$true] %s25_s28 }
   0xc   :  { %s85_s26 = sshll.u32 %s1961_s25, 4  ;;  %s1962_s29 = smov 1024   ;;  %s86_s26 = int_to_ptr.vmem [resolvable:$true] %s85_s26 }
   0xd   :  { %s1963_s30 = smov 64   ;;  %s1964_s10 = smov [#allocation2]  }
   0xe   :  { %91 = dma.hbm_to_vmem [thread:$0]  %s84_s24, 65536, %s86_s26, [#allocation11], %s1962_s29, %s1962_s29, %s1963_s30  }
   0xf   :  { %s27_s11 = sshll.u32 %s1964_s10, 4  ;;  %s49_s14 = sshll.u32 %s2136_s2, 4  ;;  %s28_s11 = int_to_ptr.vmem [resolvable:$true] %s27_s11  ;;  %s50_s14 = int_to_ptr.hbm [resolvable:$true] %s49_s14 }
  0x10   :  { %30 = dma.hbm_to_vmem [thread:$0]  %s26_s28, 32, %s28_s11, [#allocation3]  }
  0x11   :  { %s73_s16 = sshll.u32 %s2138_s4, 4  ;;  %s1965_s17 = smov [#allocation6]   ;;  %s74_s16 = int_to_ptr.hbm [resolvable:$true] %s73_s16 }
  0x12   :  { %s51_s18 = sshll.u32 %s1965_s17, 4  ;;  %s1966_s0 = smov [#allocation9]   ;;  %s52_s18 = int_to_ptr.vmem [resolvable:$true] %s51_s18 }
  0x13   :  { %54 = dma.hbm_to_vmem [thread:$0]  %s50_s14, 32, %s52_s18, [#allocation5]  }
  0x14   :  { %s75_s19 = sshll.u32 %s1966_s0, 4  ;;  %s97_s22 = sshll.u32 %s2140_s6, 4  ;;  %s76_s19 = int_to_ptr.vmem [resolvable:$true] %s75_s19  ;;  %s98_s22 = int_to_ptr.hbm [resolvable:$true] %s97_s22 }
  0x15   :  { %78 = dma.hbm_to_vmem [thread:$0]  %s74_s16, 64, %s76_s19, [#allocation8]  }
  0x16   :  { %s108_s23 = sshll.u32 %s2141_s7, 4  ;;  %s1967_s24 = smov [#allocation12]   ;;  %s109_s23 = int_to_ptr.hbm [resolvable:$true] %s108_s23 }
  0x17   :  { %s99_s4 = sshll.u32 %s1967_s24, 4  ;;  %s1968_s25 = smov [#allocation13]   ;;  %s100_s4 = int_to_ptr.vmem [resolvable:$true] %s99_s4 }
  0x18   :  { %102 = dma.hbm_to_vmem [thread:$0]  %s98_s22, 128, %s100_s4, [#allocation11]  }
  0x19   :  { %s110_s26 = sshll.u32 %s1968_s25, 4  ;;  %s111_s26 = int_to_ptr.vmem [resolvable:$true] %s110_s26 }
  0x1a   :  { %113 = dma.hbm_to_vmem [thread:$0]  %s109_s23, 128, %s111_s26, [#allocation14]  }
  0x1b   :  { %1945 = dma.done.wait [#allocation3], 32  }
  0x1c   :  { %1946 = vsyncadd [#allocation3], 4294967264 }
  0x1d   :  { %1947 = dma.done.wait [#allocation5], 1056  }
  0x1e   :  { %1948 = vsyncadd [#allocation5], 4294966240 }
  0x1f   :  { %1949 = dma.done.wait [#allocation8], 16448  }
  0x20   :  { %1950 = vsyncadd [#allocation8], 4294950848 }
  0x21   :  { %1951 = dma.done.wait [#allocation11], 65664  }
  0x22   :  { %1952 = vsyncadd [#allocation11], 4294901632 }
  0x23   :  { %1953 = dma.done.wait [#allocation14], 128  }
  0x24   :  { %1954 = vsyncadd [#allocation14], 4294967168  ;;  %v2043_v0 = vld [vmem:[#allocation13] sm:$0xff]  ;;  %v154_v2 = vld [vmem:[#allocation4 + $0x38] sm:$0xff]  ;;  %vm161_vm0 = vcmask 261120   ;;  %vm1691_vm3 = vcmask 1041408  }
  0x25   :  { %v153_v1 = vld [vmem:[#allocation4 + $0x30] sm:$0xff]  ;;  %v1706_v3 = vmin.f32 %v2043_v0, 20.0  ;;  %197 = vmatpush.msra.mxu1 %v154_v2  ;;  %v151_v4 = vld [vmem:[#allocation4 + $0x20] sm:$0xff]  ;;  %v152_v5 = vld [vmem:[#allocation4 + $0x28] sm:$0xff]  ;;  %vm1705_vm2 = vcmp.gt.f32.partialorder %v2043_v0, 20.0  ;;  %vm1693_vm4 = vcmask 1045508  }
  0x26   :  { %177 = vmatpush.msra.mxu0 %v153_v1  ;;  %v149_v6 = vld [vmem:[#allocation4 + $0x10] sm:$0xff]  ;;  %v150_v7 = vld [vmem:[#allocation4 + $0x18] sm:$0xff]  ;;  %v265_v9 = vld [vmem:[#allocation7 + $0x1e0] sm:$0xff]  ;;  %vm1695_vm5 = vcmask 1043456  }
  0x27   :  { %v1707_v8 = vmul.f32 1.442695, %v1706_v3  ;;  %198 = vmatpush.msra.mxu1 %v152_v5  ;;  %v329_v10 = vld [vmem:[#allocation7 + $0x3e0] sm:$0xff]  ;;  %343 = vmatpush.msra.mxu2 %v265_v9  ;;  %v146_v14 = vld [vmem:[#allocation2] sm:$0x3]  ;;  %v266_v16 = vld [vmem:[#allocation7 + $0x1e8] sm:$0xff] }
  0x28   :  { %178 = vmatpush.msra.mxu0 %v151_v4  ;;  %v147_v11 = vld [vmem:[#allocation4] sm:$0xff]  ;;  %v148_v12 = vld [vmem:[#allocation4 + $0x8] sm:$0xff]  ;;  %363 = vmatpush.msra.mxu3 %v329_v10  ;;  %v239_v51 = vld [vmem:[#allocation7 + $0x110] sm:$0xff] }
  0x29   :  { %v261_v13 = vld [vmem:[#allocation7 + $0x1c0] sm:$0xff]  ;;  %1749 = vpow2.f32 %v1707_v8  ;;  %199 = vmatpush.msra.mxu1 %v150_v7  ;;  %v330_v17 = vld [vmem:[#allocation7 + $0x3e8] sm:$0xff] }
  0x2a   :  { %179 = vmatpush.msra.mxu0 %v149_v6  ;;  %v325_v15 = vld [vmem:[#allocation7 + $0x3c0] sm:$0xff]  ;;  %344 = vmatpush.msra.mxu2 %v261_v13  ;;  %v262_v20 = vld [vmem:[#allocation7 + $0x1c8] sm:$0xff] }
  0x2b   :  { %364 = vmatpush.msra.mxu3 %v325_v15  ;;  %200 = vmatpush.msra.mxu1 %v148_v12  ;;  %v257_v18 = vld [vmem:[#allocation7 + $0x1a0] sm:$0xff]  ;;  %v326_v21 = vld [vmem:[#allocation7 + $0x3c8] sm:$0xff] }
  0x2c   :  { %180 = vmatpush.msra.mxu0 %v147_v11  ;;  %v321_v19 = vld [vmem:[#allocation7 + $0x3a0] sm:$0xff]  ;;  %1734 = vmatmul.msk.f32.vlgmr.msra.gmra.mxu1 %vm161_vm0, %v146_v14  ;;  %v258_v24 = vld [vmem:[#allocation7 + $0x1a8] sm:$0xff] }
  0x2d   :  { %1733 = vmatmul.msk.f32.vlgmr.msra.gmra.mxu0 %vm161_vm0, %v146_v14  ;;  %403 = vmatpush.msrb.mxu1 %v330_v17  ;;  %v253_v22 = vld [vmem:[#allocation7 + $0x180] sm:$0xff]  ;;  %v322_v25 = vld [vmem:[#allocation7 + $0x3a8] sm:$0xff] }
  0x2e   :  { %383 = vmatpush.msrb.mxu0 %v266_v16  ;;  %v317_v23 = vld [vmem:[#allocation7 + $0x380] sm:$0xff]  ;;  %345 = vmatpush.msra.mxu2 %v257_v18  ;;  %v254_v31 = vld [vmem:[#allocation7 + $0x188] sm:$0xff] }
  0x2f   :  { %365 = vmatpush.msra.mxu3 %v321_v19  ;;  %v1750_v26 = vpop.eup %1749  ;;  %404 = vmatpush.msrb.mxu1 %v326_v21  ;;  %v249_v27 = vld [vmem:[#allocation7 + $0x160] sm:$0xff]  ;;  %v318_v32 = vld [vmem:[#allocation7 + $0x388] sm:$0xff]  ;;  %v267_v21 = vld [vmem:[#allocation7 + $0x1f0] sm:$0xff] }
  0x30   :  { %384 = vmatpush.msrb.mxu0 %v262_v20  ;;  %v313_v28 = vld [vmem:[#allocation7 + $0x360] sm:$0xff]  ;;  %v1709_v29 = vadd.f32 1.0, %v1750_v26  ;;  %v1712_v30 = vmul.f32 -0.5, %v1750_v26  ;;  %346 = vmatpush.msra.mxu2 %v253_v22  ;;  %v250_v35 = vld [vmem:[#allocation7 + $0x168] sm:$0xff]  ;;  %v1715_v40 = vand.u32 2147483647, %v1750_v26 }
  0x31   :  { %366 = vmatpush.msra.mxu3 %v317_v23  ;;  %405 = vmatpush.msrb.mxu1 %v322_v25  ;;  %v245_v33 = vld [vmem:[#allocation7 + $0x140] sm:$0xff]  ;;  %v314_v36 = vld [vmem:[#allocation7 + $0x368] sm:$0xff]  ;;  %v331_v22 = vld [vmem:[#allocation7 + $0x3f0] sm:$0xff] }
  0x32   :  { %385 = vmatpush.msrb.mxu0 %v258_v24  ;;  %v309_v34 = vld [vmem:[#allocation7 + $0x340] sm:$0xff]  ;;  %1751 = vlog2.f32 %v1709_v29  ;;  %347 = vmatpush.msra.mxu2 %v249_v27  ;;  %v1713_v37 = vadd.f32 1.0, %v1712_v30  ;;  %v246_v41 = vld [vmem:[#allocation7 + $0x148] sm:$0xff]  ;;  %vm2046_vm1 = vcmp.lt.f32.partialorder %v1715_v40, 0.0004427343  ;;  %v268_v25 = vld [vmem:[#allocation7 + $0x1f8] sm:$0xff] }
  0x33   :  { %367 = vmatpush.msra.mxu3 %v313_v28  ;;  %406 = vmatpush.msrb.mxu1 %v318_v32  ;;  %v241_v38 = vld [vmem:[#allocation7 + $0x120] sm:$0xff]  ;;  %v310_v42 = vld [vmem:[#allocation7 + $0x348] sm:$0xff]  ;;  %v263_v27 = vld [vmem:[#allocation7 + $0x1d0] sm:$0xff] }
  0x34   :  { %386 = vmatpush.msrb.mxu0 %v254_v31  ;;  %v305_v39 = vld [vmem:[#allocation7 + $0x320] sm:$0xff]  ;;  %348 = vmatpush.msra.mxu2 %v245_v33  ;;  %v242_v45 = vld [vmem:[#allocation7 + $0x128] sm:$0xff]  ;;  %v1714_v47 = vmul.f32 %v1750_v26, %v1713_v37  ;;  %v332_v26 = vld [vmem:[#allocation7 + $0x3f8] sm:$0xff] }
  0x35   :  { %368 = vmatpush.msra.mxu3 %v309_v34  ;;  %407 = vmatpush.msrb.mxu1 %v314_v36  ;;  %v237_v43 = vld [vmem:[#allocation7 + $0x100] sm:$0xff]  ;;  %v306_v46 = vld [vmem:[#allocation7 + $0x328] sm:$0xff]  ;;  %v327_v28 = vld [vmem:[#allocation7 + $0x3d0] sm:$0xff] }
  0x36   :  { %387 = vmatpush.msrb.mxu0 %v250_v35  ;;  %v301_v44 = vld [vmem:[#allocation7 + $0x300] sm:$0xff]  ;;  %349 = vmatpush.msra.mxu2 %v241_v38  ;;  %v238_v52 = vld [vmem:[#allocation7 + $0x108] sm:$0xff]  ;;  %v264_v29 = vld [vmem:[#allocation7 + $0x1d8] sm:$0xff] }
  0x37   :  { %369 = vmatpush.msra.mxu3 %v305_v39  ;;  %408 = vmatpush.msrb.mxu1 %v310_v42  ;;  %v233_v48 = vld [vmem:[#allocation7 + $0xe0] sm:$0xff]  ;;  %v302_v53 = vld [vmem:[#allocation7 + $0x308] sm:$0xff]  ;;  %v328_v30 = vld [vmem:[#allocation7 + $0x3d8] sm:$0xff] }
  0x38   :  { %388 = vmatpush.msrb.mxu0 %v246_v41  ;;  %v297_v49 = vld [vmem:[#allocation7 + $0x2e0] sm:$0xff]  ;;  %v1752_v50 = vpop.eup %1751  ;;  %350 = vmatpush.msra.mxu2 %v237_v43  ;;  %v234_v57 = vld [vmem:[#allocation7 + $0xe8] sm:$0xff]  ;;  %v259_v31 = vld [vmem:[#allocation7 + $0x1b0] sm:$0xff] }
  0x39   :  { %370 = vmatpush.msra.mxu3 %v301_v44  ;;  %v1711_v54 = vmul.f32 0.6931472, %v1752_v50  ;;  %409 = vmatpush.msrb.mxu1 %v306_v46  ;;  %v229_v55 = vld [vmem:[#allocation7 + $0xc0] sm:$0xff]  ;;  %v298_v58 = vld [vmem:[#allocation7 + $0x2e8] sm:$0xff]  ;;  %v323_v32 = vld [vmem:[#allocation7 + $0x3b0] sm:$0xff] }
  0x3a   :  { %389 = vmatpush.msrb.mxu0 %v242_v45  ;;  %v293_v56 = vld [vmem:[#allocation7 + $0x2c0] sm:$0xff]  ;;  %351 = vmatpush.msra.mxu2 %v233_v48  ;;  %v230_v63 = vld [vmem:[#allocation7 + $0xc8] sm:$0xff]  ;;  %v260_v33 = vld [vmem:[#allocation7 + $0x1b8] sm:$0xff] }
  0x3b   :  { %371 = vmatpush.msra.mxu3 %v297_v49  ;;  %v1717_v59 = vsel %vm2046_vm1, %v1714_v47, %v1711_v54  ;;  %410 = vmatpush.msrb.mxu1 %v302_v53  ;;  %v225_v60 = vld [vmem:[#allocation7 + $0xa0] sm:$0xff]  ;;  %v294_v1 = vld [vmem:[#allocation7 + $0x2c8] sm:$0xff]  ;;  %v324_v34 = vld [vmem:[#allocation7 + $0x3b8] sm:$0xff] }
  0x3c   :  { %390 = vmatpush.msrb.mxu0 %v238_v52  ;;  %v289_v61 = vld [vmem:[#allocation7 + $0x2a0] sm:$0xff]  ;;  %v1718_v62 = vsel %vm1705_vm2, %v2043_v0, %v1717_v59  ;;  %352 = vmatpush.msra.mxu2 %v229_v55  ;;  %v226_v4 = vld [vmem:[#allocation7 + $0xa8] sm:$0xff]  ;;  %v255_v35 = vld [vmem:[#allocation7 + $0x190] sm:$0xff] }
  0x3d   :  { %372 = vmatpush.msra.mxu3 %v293_v56  ;;  %1719 = vst [vmem:[%s2143_s9] sm:$0xff] %v1718_v62  ;;  %411 = vmatpush.msrb.mxu1 %v298_v58  ;;  %v221_v2 = vld [vmem:[#allocation7 + $0x80] sm:$0xff]  ;;  %v290_v5 = vld [vmem:[#allocation7 + $0x2a8] sm:$0xff]  ;;  %v319_v36 = vld [vmem:[#allocation7 + $0x390] sm:$0xff] }
  0x3e   :  { %391 = vmatpush.msrb.mxu0 %v234_v57  ;;  %v285_v3 = vld [vmem:[#allocation7 + $0x280] sm:$0xff]  ;;  %353 = vmatpush.msra.mxu2 %v225_v60  ;;  %v222_v7 = vld [vmem:[#allocation7 + $0x88] sm:$0xff]  ;;  %v256_v37 = vld [vmem:[#allocation7 + $0x198] sm:$0xff] }
  0x3f   :  { %373 = vmatpush.msra.mxu3 %v289_v61  ;;  %412 = vmatpush.msrb.mxu1 %v294_v1  ;;  %v217_v6 = vld [vmem:[#allocation7 + $0x60] sm:$0xff]  ;;  %v286_v8 = vld [vmem:[#allocation7 + $0x288] sm:$0xff]  ;;  %v320_v38 = vld [vmem:[#allocation7 + $0x398] sm:$0xff] }
  0x40   :  { %392 = vmatpush.msrb.mxu0 %v230_v63  ;;  %v281_v0 = vld [vmem:[#allocation7 + $0x260] sm:$0xff]  ;;  %354 = vmatpush.msra.mxu2 %v221_v2  ;;  %v218_v11 = vld [vmem:[#allocation7 + $0x68] sm:$0xff]  ;;  %v251_v39 = vld [vmem:[#allocation7 + $0x170] sm:$0xff] }
  0x41   :  { %374 = vmatpush.msra.mxu3 %v285_v3  ;;  %413 = vmatpush.msrb.mxu1 %v290_v5  ;;  %v213_v9 = vld [vmem:[#allocation7 + $0x40] sm:$0xff]  ;;  %v282_v12 = vld [vmem:[#allocation7 + $0x268] sm:$0xff]  ;;  %v315_v40 = vld [vmem:[#allocation7 + $0x370] sm:$0xff] }
  0x42   :  { %393 = vmatpush.msrb.mxu0 %v226_v4  ;;  %v277_v10 = vld [vmem:[#allocation7 + $0x240] sm:$0xff]  ;;  %355 = vmatpush.msra.mxu2 %v217_v6  ;;  %v214_v15 = vld [vmem:[#allocation7 + $0x48] sm:$0xff]  ;;  %v252_v41 = vld [vmem:[#allocation7 + $0x178] sm:$0xff] }
  0x43   :  { %375 = vmatpush.msra.mxu3 %v281_v0  ;;  %414 = vmatpush.msrb.mxu1 %v286_v8  ;;  %v209_v13 = vld [vmem:[#allocation7 + $0x20] sm:$0xff]  ;;  %v278_v16 = vld [vmem:[#allocation7 + $0x248] sm:$0xff]  ;;  %v316_v42 = vld [vmem:[#allocation7 + $0x378] sm:$0xff] }
  0x44   :  { %394 = vmatpush.msrb.mxu0 %v222_v7  ;;  %v273_v14 = vld [vmem:[#allocation7 + $0x220] sm:$0xff]  ;;  %356 = vmatpush.msra.mxu2 %v213_v9  ;;  %v210_v19 = vld [vmem:[#allocation7 + $0x28] sm:$0xff]  ;;  %v247_v43 = vld [vmem:[#allocation7 + $0x150] sm:$0xff] }
  0x45   :  { %376 = vmatpush.msra.mxu3 %v277_v10  ;;  %415 = vmatpush.msrb.mxu1 %v282_v12  ;;  %v205_v17 = vld [vmem:[#allocation7] sm:$0xff]  ;;  %v274_v20 = vld [vmem:[#allocation7 + $0x228] sm:$0xff]  ;;  %v311_v44 = vld [vmem:[#allocation7 + $0x350] sm:$0xff] }
  0x46   :  { %395 = vmatpush.msrb.mxu0 %v218_v11  ;;  %v269_v18 = vld [vmem:[#allocation7 + $0x200] sm:$0xff]  ;;  %357 = vmatpush.msra.mxu2 %v209_v13  ;;  %v206_v23 = vld [vmem:[#allocation7 + $0x8] sm:$0xff]  ;;  %v248_v45 = vld [vmem:[#allocation7 + $0x158] sm:$0xff] }
  0x47   :  { %377 = vmatpush.msra.mxu3 %v273_v14  ;;  %416 = vmatpush.msrb.mxu1 %v278_v16  ;;  %v270_v24 = vld [vmem:[#allocation7 + $0x208] sm:$0xff]  ;;  %v312_v46 = vld [vmem:[#allocation7 + $0x358] sm:$0xff]  ;;  %v243_v47 = vld [vmem:[#allocation7 + $0x130] sm:$0xff] }
  0x48   :  { %396 = vmatpush.msrb.mxu0 %v214_v15  ;;  %358 = vmatpush.msra.mxu2 %v205_v17  ;;  %v307_v48 = vld [vmem:[#allocation7 + $0x330] sm:$0xff]  ;;  %v244_v49 = vld [vmem:[#allocation7 + $0x138] sm:$0xff] }
  0x49   :  { %378 = vmatpush.msra.mxu3 %v269_v18  ;;  %417 = vmatpush.msrb.mxu1 %v274_v20  ;;  %v308_v50 = vld [vmem:[#allocation7 + $0x338] sm:$0xff]  ;;  %v303_v52 = vld [vmem:[#allocation7 + $0x310] sm:$0xff] }
  0x4a   :  { %397 = vmatpush.msrb.mxu0 %v210_v19  ;;  %423 = vmatpush.msrb.mxu2 %v267_v21  ;;  %v240_v53 = vld [vmem:[#allocation7 + $0x118] sm:$0xff]  ;;  %v235_v55 = vld [vmem:[#allocation7 + $0xf0] sm:$0xff] }
  0x4b   :  { %443 = vmatpush.msrb.mxu3 %v331_v22  ;;  %418 = vmatpush.msrb.mxu1 %v270_v24  ;;  %v304_v54 = vld [vmem:[#allocation7 + $0x318] sm:$0xff]  ;;  %v299_v56 = vld [vmem:[#allocation7 + $0x2f0] sm:$0xff] }
  0x4c   :  { %398 = vmatpush.msrb.mxu0 %v206_v23  ;;  %424 = vmatpush.msrb.mxu2 %v263_v27  ;;  %v236_v57 = vld [vmem:[#allocation7 + $0xf8] sm:$0xff]  ;;  %v231_v59 = vld [vmem:[#allocation7 + $0xd0] sm:$0xff] }
  0x4d   :  { %483 = vmatpush.msra.mxu1 %v332_v26  ;;  %444 = vmatpush.msrb.mxu3 %v327_v28  ;;  %v300_v58 = vld [vmem:[#allocation7 + $0x2f8] sm:$0xff]  ;;  %v295_v60 = vld [vmem:[#allocation7 + $0x2d0] sm:$0xff] }
  0x4e   :  { %463 = vmatpush.msra.mxu0 %v268_v25  ;;  %425 = vmatpush.msrb.mxu2 %v259_v31  ;;  %v232_v61 = vld [vmem:[#allocation7 + $0xd8] sm:$0xff]  ;;  %v227_v63 = vld [vmem:[#allocation7 + $0xb0] sm:$0xff]  ;;  %v627_v31 = vld [vmem:[#allocation10 + $0x3c0] sm:$0xff] }
  0x4f   :  { %484 = vmatpush.msra.mxu1 %v328_v30  ;;  %445 = vmatpush.msrb.mxu3 %v323_v32  ;;  %v296_v62 = vld [vmem:[#allocation7 + $0x2d8] sm:$0xff]  ;;  %v291_v1 = vld [vmem:[#allocation7 + $0x2b0] sm:$0xff]  ;;  %v755_v30 = vld [vmem:[#allocation10 + $0x7c0] sm:$0xff] }
  0x50   :  { %464 = vmatpush.msra.mxu0 %v264_v29  ;;  %426 = vmatpush.msrb.mxu2 %v255_v35  ;;  %v228_v2 = vld [vmem:[#allocation7 + $0xb8] sm:$0xff]  ;;  %v223_v4 = vld [vmem:[#allocation7 + $0x90] sm:$0xff]  ;;  %v1011_v32 = vld [vmem:[#allocation10 + $0xfc0] sm:$0xff] }
  0x51   :  { %485 = vmatpush.msra.mxu1 %v324_v34  ;;  %446 = vmatpush.msrb.mxu3 %v319_v36  ;;  %v292_v3 = vld [vmem:[#allocation7 + $0x2b8] sm:$0xff]  ;;  %v287_v5 = vld [vmem:[#allocation7 + $0x290] sm:$0xff]  ;;  %v747_v34 = vld [vmem:[#allocation10 + $0x780] sm:$0xff] }
  0x52   :  { %465 = vmatpush.msra.mxu0 %v260_v33  ;;  %427 = vmatpush.msrb.mxu2 %v251_v39  ;;  %v224_v6 = vld [vmem:[#allocation7 + $0x98] sm:$0xff]  ;;  %v219_v7 = vld [vmem:[#allocation7 + $0x70] sm:$0xff]  ;;  %v883_v33 = vld [vmem:[#allocation10 + $0xbc0] sm:$0xff] }
  0x53   :  { %486 = vmatpush.msra.mxu1 %v320_v38  ;;  %447 = vmatpush.msrb.mxu3 %v315_v40  ;;  %v288_v0 = vld [vmem:[#allocation7 + $0x298] sm:$0xff]  ;;  %v283_v8 = vld [vmem:[#allocation7 + $0x270] sm:$0xff]  ;;  %v619_v35 = vld [vmem:[#allocation10 + $0x380] sm:$0xff] }
  0x54   :  { %466 = vmatpush.msra.mxu0 %v256_v37  ;;  %428 = vmatpush.msrb.mxu2 %v247_v43  ;;  %v220_v9 = vld [vmem:[#allocation7 + $0x78] sm:$0xff]  ;;  %v215_v11 = vld [vmem:[#allocation7 + $0x50] sm:$0xff]  ;;  %v1003_v36 = vld [vmem:[#allocation10 + $0xf80] sm:$0xff] }
  0x55   :  { %487 = vmatpush.msra.mxu1 %v316_v42  ;;  %448 = vmatpush.msrb.mxu3 %v311_v44  ;;  %v284_v10 = vld [vmem:[#allocation7 + $0x278] sm:$0xff]  ;;  %v279_v12 = vld [vmem:[#allocation7 + $0x250] sm:$0xff]  ;;  %v875_v37 = vld [vmem:[#allocation10 + $0xb80] sm:$0xff] }
  0x56   :  { %467 = vmatpush.msra.mxu0 %v252_v41  ;;  %429 = vmatpush.msrb.mxu2 %v243_v47  ;;  %v216_v13 = vld [vmem:[#allocation7 + $0x58] sm:$0xff]  ;;  %v211_v15 = vld [vmem:[#allocation7 + $0x30] sm:$0xff]  ;;  %v739_v38 = vld [vmem:[#allocation10 + $0x740] sm:$0xff] }
  0x57   :  { %488 = vmatpush.msra.mxu1 %v312_v46  ;;  %449 = vmatpush.msrb.mxu3 %v307_v48  ;;  %v280_v14 = vld [vmem:[#allocation7 + $0x258] sm:$0xff]  ;;  %v275_v16 = vld [vmem:[#allocation7 + $0x230] sm:$0xff]  ;;  %v611_v39 = vld [vmem:[#allocation10 + $0x340] sm:$0xff] }
  0x58   :  { %468 = vmatpush.msra.mxu0 %v248_v45  ;;  %430 = vmatpush.msrb.mxu2 %v239_v51  ;;  %v212_v17 = vld [vmem:[#allocation7 + $0x38] sm:$0xff]  ;;  %v207_v19 = vld [vmem:[#allocation7 + $0x10] sm:$0xff]  ;;  %v995_v40 = vld [vmem:[#allocation10 + $0xf40] sm:$0xff] }
  0x59   :  { %489 = vmatpush.msra.mxu1 %v308_v50  ;;  %450 = vmatpush.msrb.mxu3 %v303_v52  ;;  %v276_v18 = vld [vmem:[#allocation7 + $0x238] sm:$0xff]  ;;  %v271_v20 = vld [vmem:[#allocation7 + $0x210] sm:$0xff]  ;;  %v867_v41 = vld [vmem:[#allocation10 + $0xb40] sm:$0xff] }
  0x5a   :  { %469 = vmatpush.msra.mxu0 %v244_v49  ;;  %431 = vmatpush.msrb.mxu2 %v235_v55  ;;  %v208_v21 = vld [vmem:[#allocation7 + $0x18] sm:$0xff]  ;;  %v731_v42 = vld [vmem:[#allocation10 + $0x700] sm:$0xff] }
  0x5b   :  { %490 = vmatpush.msra.mxu1 %v304_v54  ;;  %451 = vmatpush.msrb.mxu3 %v299_v56  ;;  %v272_v22 = vld [vmem:[#allocation7 + $0x218] sm:$0xff]  ;;  %v603_v43 = vld [vmem:[#allocation10 + $0x300] sm:$0xff] }
  0x5c   :  { %470 = vmatpush.msra.mxu0 %v240_v53  ;;  %432 = vmatpush.msrb.mxu2 %v231_v59  ;;  %v155_v23 = vld [vmem:[#allocation6] sm:$0x3]  ;;  %v987_v44 = vld [vmem:[#allocation10 + $0xf00] sm:$0xff] }
  0x5d   :  { %491 = vmatpush.msra.mxu1 %v300_v58  ;;  %452 = vmatpush.msrb.mxu3 %v295_v60  ;;  %v157_v24 = vperm.slane %v155_v23, 0  ;;  %v158_v25 = vperm.slane %v155_v23, 1  ;;  %v859_v45 = vld [vmem:[#allocation10 + $0xb00] sm:$0xff] }
  0x5e   :  { %471 = vmatpush.msra.mxu0 %v236_v57  ;;  %433 = vmatpush.msrb.mxu2 %v227_v63  ;;  %v723_v46 = vld [vmem:[#allocation10 + $0x6c0] sm:$0xff] }
  0x5f   :  { %492 = vmatpush.msra.mxu1 %v296_v62  ;;  %453 = vmatpush.msrb.mxu3 %v291_v1  ;;  %v595_v47 = vld [vmem:[#allocation10 + $0x2c0] sm:$0xff] }
  0x60   :  { %472 = vmatpush.msra.mxu0 %v232_v61  ;;  %434 = vmatpush.msrb.mxu2 %v223_v4  ;;  %v979_v48 = vld [vmem:[#allocation10 + $0xec0] sm:$0xff] }
  0x61   :  { %493 = vmatpush.msra.mxu1 %v292_v3  ;;  %454 = vmatpush.msrb.mxu3 %v287_v5  ;;  %v851_v49 = vld [vmem:[#allocation10 + $0xac0] sm:$0xff] }
  0x62   :  { %473 = vmatpush.msra.mxu0 %v228_v2  ;;  %435 = vmatpush.msrb.mxu2 %v219_v7  ;;  %v715_v50 = vld [vmem:[#allocation10 + $0x680] sm:$0xff] }
  0x63   :  { %494 = vmatpush.msra.mxu1 %v288_v0  ;;  %455 = vmatpush.msrb.mxu3 %v283_v8  ;;  %v587_v51 = vld [vmem:[#allocation10 + $0x280] sm:$0xff] }
  0x64   :  { %474 = vmatpush.msra.mxu0 %v224_v6  ;;  %436 = vmatpush.msrb.mxu2 %v215_v11  ;;  %v971_v52 = vld [vmem:[#allocation10 + $0xe80] sm:$0xff] }
  0x65   :  { %495 = vmatpush.msra.mxu1 %v284_v10  ;;  %456 = vmatpush.msrb.mxu3 %v279_v12  ;;  %v843_v53 = vld [vmem:[#allocation10 + $0xa80] sm:$0xff] }
  0x66   :  { %475 = vmatpush.msra.mxu0 %v220_v9  ;;  %437 = vmatpush.msrb.mxu2 %v211_v15  ;;  %v707_v54 = vld [vmem:[#allocation10 + $0x640] sm:$0xff] }
  0x67   :  { %496 = vmatpush.msra.mxu1 %v280_v14  ;;  %457 = vmatpush.msrb.mxu3 %v275_v16  ;;  %v579_v55 = vld [vmem:[#allocation10 + $0x240] sm:$0xff] }
  0x68   :  { %476 = vmatpush.msra.mxu0 %v216_v13  ;;  %438 = vmatpush.msrb.mxu2 %v207_v19  ;;  %v963_v56 = vld [vmem:[#allocation10 + $0xe40] sm:$0xff] }
  0x69   :  { %497 = vmatpush.msra.mxu1 %v276_v18  ;;  %458 = vmatpush.msrb.mxu3 %v271_v20  ;;  %v835_v57 = vld [vmem:[#allocation10 + $0xa40] sm:$0xff] }
  0x6a   :  { %477 = vmatpush.msra.mxu0 %v212_v17  ;;  %v699_v58 = vld [vmem:[#allocation10 + $0x600] sm:$0xff] }
  0x6b   :  { %498 = vmatpush.msra.mxu1 %v272_v22  ;;  %v571_v59 = vld [vmem:[#allocation10 + $0x200] sm:$0xff] }
  0x6c   :  { %478 = vmatpush.msra.mxu0 %v208_v21  ;;  %v955_v60 = vld [vmem:[#allocation10 + $0xe00] sm:$0xff] }
  0x6d   :  { %v827_v61 = vld [vmem:[#allocation10 + $0xa00] sm:$0xff] }
  0x6e   :  { %v691_v62 = vld [vmem:[#allocation10 + $0x5c0] sm:$0xff] }
  0x6f   :  { %v563_v63 = vld [vmem:[#allocation10 + $0x1c0] sm:$0xff] }
  0x70   :  { %v947_v1 = vld [vmem:[#allocation10 + $0xdc0] sm:$0xff] }
  0x71   :  { %v819_v2 = vld [vmem:[#allocation10 + $0x9c0] sm:$0xff] }
  0x72   :  { %v683_v3 = vld [vmem:[#allocation10 + $0x580] sm:$0xff] }
  0x73   :  { %v555_v4 = vld [vmem:[#allocation10 + $0x180] sm:$0xff] }
  0x74   :  { %v939_v5 = vld [vmem:[#allocation10 + $0xd80] sm:$0xff] }
  0x75   :  { %v811_v6 = vld [vmem:[#allocation10 + $0x980] sm:$0xff] }
  0x76   :  { %v675_v0 = vld [vmem:[#allocation10 + $0x540] sm:$0xff] }
  0x77   :  { %v547_v7 = vld [vmem:[#allocation10 + $0x140] sm:$0xff] }
  0x78   :  { %v931_v8 = vld [vmem:[#allocation10 + $0xd40] sm:$0xff] }
  0x79   :  { %v803_v9 = vld [vmem:[#allocation10 + $0x940] sm:$0xff] }
  0x7a   :  { %v667_v10 = vld [vmem:[#allocation10 + $0x500] sm:$0xff] }
  0x7b   :  { %v539_v11 = vld [vmem:[#allocation10 + $0x100] sm:$0xff] }
  0x7c   :  { %v923_v12 = vld [vmem:[#allocation10 + $0xd00] sm:$0xff] }
  0x7d   :  { %v795_v13 = vld [vmem:[#allocation10 + $0x900] sm:$0xff] }
  0x7e   :  { %v659_v14 = vld [vmem:[#allocation10 + $0x4c0] sm:$0xff] }
  0x7f   :  { %v531_v15 = vld [vmem:[#allocation10 + $0xc0] sm:$0xff] }
  0x80   :  { %v915_v16 = vld [vmem:[#allocation10 + $0xcc0] sm:$0xff] }
  0x81   :  { %v787_v17 = vld [vmem:[#allocation10 + $0x8c0] sm:$0xff] }
  0x82   :  { %v651_v18 = vld [vmem:[#allocation10 + $0x480] sm:$0xff] }
  0x83   :  { %v523_v19 = vld [vmem:[#allocation10 + $0x80] sm:$0xff] }
  0x84   :  { %v907_v20 = vld [vmem:[#allocation10 + $0xc80] sm:$0xff] }
  0x85   :  { %v779_v21 = vld [vmem:[#allocation10 + $0x880] sm:$0xff] }
  0x86   :  { %v643_v22 = vld [vmem:[#allocation10 + $0x440] sm:$0xff] }
  0x87   :  { %v515_v23 = vld [vmem:[#allocation10 + $0x40] sm:$0xff] }
  0xa9   :  { %v202_v27 = vpop.f32.mrf.mxu1 }
  0xaa   :  { %v182_v26 = vpop.f32.mrf.mxu0  ;;  %v203_v29 = vadd.f32 %v202_v27, %v158_v25  ;;  %v771_v25 = vld [vmem:[#allocation10 + $0x840] sm:$0xff] }
  0xab   :  { %v183_v28 = vadd.f32 %v182_v26, %v157_v24  ;;  %v899_v24 = vld [vmem:[#allocation10 + $0xc40] sm:$0xff] }
  0xac   :  { %379 = vmatmul.f32.vlgmr.msra.gmra.mxu3 %v203_v29  ;;  %419 = vmatmul.f32.vlgmr.msrb.gmra.mxu1 %v203_v29  ;;  %v635_v26 = vld [vmem:[#allocation10 + $0x400] sm:$0xff] }
  0xad   :  { %359 = vmatmul.f32.vlgmr.msra.gmra.mxu2 %v183_v28  ;;  %399 = vmatmul.f32.vlgmr.msrb.gmra.mxu0 %v183_v28  ;;  %v507_v27 = vld [vmem:[#allocation10] sm:$0xff] }
  0xae   :  { %1057 = vmatpush.msra.mxu3 %v755_v30  ;;  %1037 = vmatpush.msra.mxu2 %v627_v31  ;;  %v891_v30 = vld [vmem:[#allocation10 + $0xc00] sm:$0xff] }
  0xaf   :  { %1097 = vmatpush.msrb.mxu1 %v1011_v32  ;;  %1077 = vmatpush.msrb.mxu0 %v883_v33  ;;  %v763_v31 = vld [vmem:[#allocation10 + $0x800] sm:$0xff]  ;;  %v748_v32 = vld [vmem:[#allocation10 + $0x788] sm:$0xff] }
  0xb0   :  { %1058 = vmatpush.msra.mxu3 %v747_v34  ;;  %1038 = vmatpush.msra.mxu2 %v619_v35  ;;  %v620_v33 = vld [vmem:[#allocation10 + $0x388] sm:$0xff] }
  0xb1   :  { %1098 = vmatpush.msrb.mxu1 %v1003_v36  ;;  %1078 = vmatpush.msrb.mxu0 %v875_v37  ;;  %v1012_v34 = vld [vmem:[#allocation10 + $0xfc8] sm:$0xff] }
  0xb2   :  { %1059 = vmatpush.msra.mxu3 %v739_v38  ;;  %1039 = vmatpush.msra.mxu2 %v611_v39  ;;  %v884_v35 = vld [vmem:[#allocation10 + $0xbc8] sm:$0xff] }
  0xb3   :  { %1099 = vmatpush.msrb.mxu1 %v995_v40  ;;  %1079 = vmatpush.msrb.mxu0 %v867_v41  ;;  %v740_v36 = vld [vmem:[#allocation10 + $0x748] sm:$0xff] }
  0xb4   :  { %459 = vmatmul.f32.vlgmr.msrb.gmra.mxu3 %v203_v29  ;;  %499 = vmatmul.f32.vlgmr.msra.gmra.mxu1 %v203_v29  ;;  %v628_v29 = vld [vmem:[#allocation10 + $0x3c8] sm:$0xff] }
  0xb5   :  { %439 = vmatmul.f32.vlgmr.msrb.gmra.mxu2 %v183_v28  ;;  %479 = vmatmul.f32.vlgmr.msra.gmra.mxu0 %v183_v28  ;;  %v756_v28 = vld [vmem:[#allocation10 + $0x7c8] sm:$0xff] }
  0xb6   :  { %1060 = vmatpush.msra.mxu3 %v731_v42  ;;  %1040 = vmatpush.msra.mxu2 %v603_v43  ;;  %v612_v37 = vld [vmem:[#allocation10 + $0x348] sm:$0xff] }
  0xb7   :  { %1100 = vmatpush.msrb.mxu1 %v987_v44  ;;  %1080 = vmatpush.msrb.mxu0 %v859_v45  ;;  %v1004_v38 = vld [vmem:[#allocation10 + $0xf88] sm:$0xff] }
  0xb8   :  { %1061 = vmatpush.msra.mxu3 %v723_v46  ;;  %1041 = vmatpush.msra.mxu2 %v595_v47  ;;  %v876_v39 = vld [vmem:[#allocation10 + $0xb88] sm:$0xff] }
  0xb9   :  { %1101 = vmatpush.msrb.mxu1 %v979_v48  ;;  %1081 = vmatpush.msrb.mxu0 %v851_v49  ;;  %v732_v40 = vld [vmem:[#allocation10 + $0x708] sm:$0xff] }
  0xba   :  { %1062 = vmatpush.msra.mxu3 %v715_v50  ;;  %1042 = vmatpush.msra.mxu2 %v587_v51  ;;  %v604_v41 = vld [vmem:[#allocation10 + $0x308] sm:$0xff] }
  0xbb   :  { %1102 = vmatpush.msrb.mxu1 %v971_v52  ;;  %1082 = vmatpush.msrb.mxu0 %v843_v53  ;;  %v996_v42 = vld [vmem:[#allocation10 + $0xf48] sm:$0xff] }
  0xbc   :  { %1063 = vmatpush.msra.mxu3 %v707_v54  ;;  %1043 = vmatpush.msra.mxu2 %v579_v55  ;;  %v868_v43 = vld [vmem:[#allocation10 + $0xb48] sm:$0xff] }
  0xbd   :  { %1103 = vmatpush.msrb.mxu1 %v963_v56  ;;  %1083 = vmatpush.msrb.mxu0 %v835_v57  ;;  %v724_v44 = vld [vmem:[#allocation10 + $0x6c8] sm:$0xff] }
  0xbe   :  { %1064 = vmatpush.msra.mxu3 %v699_v58  ;;  %1044 = vmatpush.msra.mxu2 %v571_v59  ;;  %v596_v45 = vld [vmem:[#allocation10 + $0x2c8] sm:$0xff] }
  0xbf   :  { %1104 = vmatpush.msrb.mxu1 %v955_v60  ;;  %1084 = vmatpush.msrb.mxu0 %v827_v61  ;;  %v988_v46 = vld [vmem:[#allocation10 + $0xf08] sm:$0xff] }
  0xc0   :  { %1065 = vmatpush.msra.mxu3 %v691_v62  ;;  %1045 = vmatpush.msra.mxu2 %v563_v63  ;;  %v860_v47 = vld [vmem:[#allocation10 + $0xb08] sm:$0xff] }
  0xc1   :  { %1105 = vmatpush.msrb.mxu1 %v947_v1  ;;  %1085 = vmatpush.msrb.mxu0 %v819_v2  ;;  %v716_v48 = vld [vmem:[#allocation10 + $0x688] sm:$0xff] }
  0xc2   :  { %1066 = vmatpush.msra.mxu3 %v683_v3  ;;  %1046 = vmatpush.msra.mxu2 %v555_v4  ;;  %v588_v49 = vld [vmem:[#allocation10 + $0x288] sm:$0xff] }
  0xc3   :  { %1106 = vmatpush.msrb.mxu1 %v939_v5  ;;  %1086 = vmatpush.msrb.mxu0 %v811_v6  ;;  %v980_v50 = vld [vmem:[#allocation10 + $0xec8] sm:$0xff] }
  0xc4   :  { %1067 = vmatpush.msra.mxu3 %v675_v0  ;;  %1047 = vmatpush.msra.mxu2 %v547_v7  ;;  %v852_v51 = vld [vmem:[#allocation10 + $0xac8] sm:$0xff] }
  0xc5   :  { %1107 = vmatpush.msrb.mxu1 %v931_v8  ;;  %1087 = vmatpush.msrb.mxu0 %v803_v9  ;;  %v708_v52 = vld [vmem:[#allocation10 + $0x648] sm:$0xff] }
  0xc6   :  { %1068 = vmatpush.msra.mxu3 %v667_v10  ;;  %1048 = vmatpush.msra.mxu2 %v539_v11  ;;  %v580_v53 = vld [vmem:[#allocation10 + $0x248] sm:$0xff] }
  0xc7   :  { %1108 = vmatpush.msrb.mxu1 %v923_v12  ;;  %1088 = vmatpush.msrb.mxu0 %v795_v13  ;;  %v972_v54 = vld [vmem:[#allocation10 + $0xe88] sm:$0xff] }
  0xc8   :  { %1069 = vmatpush.msra.mxu3 %v659_v14  ;;  %1049 = vmatpush.msra.mxu2 %v531_v15  ;;  %v700_v55 = vld [vmem:[#allocation10 + $0x608] sm:$0xff] }
  0xc9   :  { %1109 = vmatpush.msrb.mxu1 %v915_v16  ;;  %1089 = vmatpush.msrb.mxu0 %v787_v17  ;;  %v572_v56 = vld [vmem:[#allocation10 + $0x208] sm:$0xff] }
  0xca   :  { %1070 = vmatpush.msra.mxu3 %v651_v18  ;;  %1050 = vmatpush.msra.mxu2 %v523_v19  ;;  %v964_v57 = vld [vmem:[#allocation10 + $0xe48] sm:$0xff] }
  0xcb   :  { %1110 = vmatpush.msrb.mxu1 %v907_v20  ;;  %1090 = vmatpush.msrb.mxu0 %v779_v21  ;;  %v692_v58 = vld [vmem:[#allocation10 + $0x5c8] sm:$0xff] }
  0xcc   :  { %1071 = vmatpush.msra.mxu3 %v643_v22  ;;  %1051 = vmatpush.msra.mxu2 %v515_v23  ;;  %v564_v59 = vld [vmem:[#allocation10 + $0x1c8] sm:$0xff] }
  0xcd   :  { %1111 = vmatpush.msrb.mxu1 %v899_v24  ;;  %1091 = vmatpush.msrb.mxu0 %v771_v25  ;;  %v956_v60 = vld [vmem:[#allocation10 + $0xe08] sm:$0xff] }
  0xce   :  { %1072 = vmatpush.msra.mxu3 %v635_v26  ;;  %1052 = vmatpush.msra.mxu2 %v507_v27  ;;  %v684_v61 = vld [vmem:[#allocation10 + $0x588] sm:$0xff] }
  0xcf   :  { %1112 = vmatpush.msrb.mxu1 %v891_v30  ;;  %1092 = vmatpush.msrb.mxu0 %v763_v31  ;;  %v676_v62 = vld [vmem:[#allocation10 + $0x548] sm:$0xff]  ;;  %v333_v30 = vld [vmem:[#allocation9] sm:$0xf] }
  0xd0   :  { %1137 = vmatpush.msrb.mxu3 %v756_v28  ;;  %1117 = vmatpush.msrb.mxu2 %v628_v29  ;;  %v668_v63 = vld [vmem:[#allocation10 + $0x508] sm:$0xff]  ;;  %v336_v31 = vperm.slane %v333_v30, 1 }
  0xd1   :  { %1177 = vmatpush.msra.mxu1 %v1012_v34  ;;  %1157 = vmatpush.msra.mxu0 %v884_v35  ;;  %v556_v1 = vld [vmem:[#allocation10 + $0x188] sm:$0xff]  ;;  %v335_v35 = vperm.slane %v333_v30, 0 }
  0xd2   :  { %1138 = vmatpush.msrb.mxu3 %v748_v32  ;;  %1118 = vmatpush.msrb.mxu2 %v620_v33  ;;  %v660_v2 = vld [vmem:[#allocation10 + $0x4c8] sm:$0xff] }
  0xd3   :  { %1178 = vmatpush.msra.mxu1 %v1004_v38  ;;  %1158 = vmatpush.msra.mxu0 %v876_v39  ;;  %v844_v3 = vld [vmem:[#allocation10 + $0xa88] sm:$0xff] }
  0xd4   :  { %1139 = vmatpush.msrb.mxu3 %v740_v36  ;;  %1119 = vmatpush.msrb.mxu2 %v612_v37  ;;  %v948_v4 = vld [vmem:[#allocation10 + $0xdc8] sm:$0xff] }
  0xd5   :  { %1179 = vmatpush.msra.mxu1 %v996_v42  ;;  %1159 = vmatpush.msra.mxu0 %v868_v43  ;;  %v548_v5 = vld [vmem:[#allocation10 + $0x148] sm:$0xff]  ;;  %v749_v43 = vld [vmem:[#allocation10 + $0x790] sm:$0xff] }
  0xd6   :  { %1140 = vmatpush.msrb.mxu3 %v732_v40  ;;  %1120 = vmatpush.msrb.mxu2 %v604_v41  ;;  %v652_v6 = vld [vmem:[#allocation10 + $0x488] sm:$0xff]  ;;  %v757_v40 = vld [vmem:[#allocation10 + $0x7d0] sm:$0xff]  ;;  %v338_v41 = vperm.slane %v333_v30, 3 }
  0xd7   :  { %1180 = vmatpush.msra.mxu1 %v988_v46  ;;  %1160 = vmatpush.msra.mxu0 %v860_v47  ;;  %v836_v0 = vld [vmem:[#allocation10 + $0xa48] sm:$0xff]  ;;  %v741_v47 = vld [vmem:[#allocation10 + $0x750] sm:$0xff] }
  0xd8   :  { %1141 = vmatpush.msrb.mxu3 %v724_v44  ;;  %1121 = vmatpush.msrb.mxu2 %v596_v45  ;;  %v940_v7 = vld [vmem:[#allocation10 + $0xd88] sm:$0xff] }
  0xd9   :  { %1181 = vmatpush.msra.mxu1 %v980_v50  ;;  %1161 = vmatpush.msra.mxu0 %v852_v51  ;;  %v540_v8 = vld [vmem:[#allocation10 + $0x108] sm:$0xff]  ;;  %v629_v50 = vld [vmem:[#allocation10 + $0x3d0] sm:$0xff]  ;;  %v337_v51 = vperm.slane %v333_v30, 2 }
  0xda   :  { %1142 = vmatpush.msrb.mxu3 %v716_v48  ;;  %1122 = vmatpush.msrb.mxu2 %v588_v49  ;;  %v644_v9 = vld [vmem:[#allocation10 + $0x448] sm:$0xff]  ;;  %v653_v30 = vld [vmem:[#allocation10 + $0x490] sm:$0xff] }
  0xdb   :  { %1182 = vmatpush.msra.mxu1 %v972_v54  ;;  %1162 = vmatpush.msra.mxu0 %v844_v3  ;;  %v828_v10 = vld [vmem:[#allocation10 + $0xa08] sm:$0xff]  ;;  %v709_v3 = vld [vmem:[#allocation10 + $0x650] sm:$0xff] }
  0xdc   :  { %1143 = vmatpush.msrb.mxu3 %v708_v52  ;;  %1123 = vmatpush.msrb.mxu2 %v580_v53  ;;  %v932_v11 = vld [vmem:[#allocation10 + $0xd48] sm:$0xff]  ;;  %v733_v53 = vld [vmem:[#allocation10 + $0x710] sm:$0xff] }
  0xdd   :  { %1183 = vmatpush.msra.mxu1 %v964_v57  ;;  %1163 = vmatpush.msra.mxu0 %v836_v0  ;;  %v532_v12 = vld [vmem:[#allocation10 + $0xc8] sm:$0xff]  ;;  %v725_v57 = vld [vmem:[#allocation10 + $0x6d0] sm:$0xff] }
  0xde   :  { %1144 = vmatpush.msrb.mxu3 %v700_v55  ;;  %1124 = vmatpush.msrb.mxu2 %v572_v56  ;;  %v636_v13 = vld [vmem:[#allocation10 + $0x408] sm:$0xff]  ;;  %v621_v56 = vld [vmem:[#allocation10 + $0x390] sm:$0xff] }
  0xdf   :  { %1184 = vmatpush.msra.mxu1 %v956_v60  ;;  %1164 = vmatpush.msra.mxu0 %v828_v10  ;;  %v820_v14 = vld [vmem:[#allocation10 + $0x9c8] sm:$0xff]  ;;  %v597_v0 = vld [vmem:[#allocation10 + $0x2d0] sm:$0xff] }
  0xe0   :  { %1145 = vmatpush.msrb.mxu3 %v692_v58  ;;  %1125 = vmatpush.msrb.mxu2 %v564_v59  ;;  %v924_v15 = vld [vmem:[#allocation10 + $0xd08] sm:$0xff]  ;;  %v1013_v59 = vld [vmem:[#allocation10 + $0xfd0] sm:$0xff] }
  0xe1   :  { %1185 = vmatpush.msra.mxu1 %v948_v4  ;;  %1165 = vmatpush.msra.mxu0 %v820_v14  ;;  %v524_v16 = vld [vmem:[#allocation10 + $0x88] sm:$0xff]  ;;  %v589_v10 = vld [vmem:[#allocation10 + $0x290] sm:$0xff] }
  0xe2   :  { %1146 = vmatpush.msrb.mxu3 %v684_v61  ;;  %1126 = vmatpush.msrb.mxu2 %v556_v1  ;;  %v812_v17 = vld [vmem:[#allocation10 + $0x988] sm:$0xff]  ;;  %v613_v61 = vld [vmem:[#allocation10 + $0x350] sm:$0xff] }
  0xe3   :  { %1186 = vmatpush.msra.mxu1 %v940_v7  ;;  %v916_v18 = vld [vmem:[#allocation10 + $0xcc8] sm:$0xff]  ;;  %1166 = vmatpush.msra.mxu0 %v812_v17  ;;  %v1005_v1 = vld [vmem:[#allocation10 + $0xf90] sm:$0xff] }
  0xe4   :  { %1147 = vmatpush.msrb.mxu3 %v676_v62  ;;  %1127 = vmatpush.msrb.mxu2 %v548_v5  ;;  %v516_v19 = vld [vmem:[#allocation10 + $0x48] sm:$0xff]  ;;  %v717_v62 = vld [vmem:[#allocation10 + $0x690] sm:$0xff] }
  0xe5   :  { %1187 = vmatpush.msra.mxu1 %v932_v11  ;;  %v804_v20 = vld [vmem:[#allocation10 + $0x948] sm:$0xff]  ;;  %v997_v5 = vld [vmem:[#allocation10 + $0xf50] sm:$0xff] }
  0xe6   :  { %1148 = vmatpush.msrb.mxu3 %v668_v63  ;;  %1128 = vmatpush.msrb.mxu2 %v540_v8  ;;  %v908_v21 = vld [vmem:[#allocation10 + $0xc88] sm:$0xff]  ;;  %v885_v7 = vld [vmem:[#allocation10 + $0xbd0] sm:$0xff] }
  0xe7   :  { %1188 = vmatpush.msra.mxu1 %v924_v15  ;;  %1167 = vmatpush.msra.mxu0 %v804_v20  ;;  %v508_v22 = vld [vmem:[#allocation10 + $0x8] sm:$0xff]  ;;  %v989_v8 = vld [vmem:[#allocation10 + $0xf10] sm:$0xff] }
  0xe8   :  { %1149 = vmatpush.msrb.mxu3 %v660_v2  ;;  %1129 = vmatpush.msrb.mxu2 %v532_v12  ;;  %v796_v23 = vld [vmem:[#allocation10 + $0x908] sm:$0xff]  ;;  %v605_v2 = vld [vmem:[#allocation10 + $0x310] sm:$0xff] }
  0xe9   :  { %1189 = vmatpush.msra.mxu1 %v916_v18  ;;  %v900_v24 = vld [vmem:[#allocation10 + $0xc48] sm:$0xff]  ;;  %1168 = vmatpush.msra.mxu0 %v796_v23  ;;  %v877_v11 = vld [vmem:[#allocation10 + $0xb90] sm:$0xff] }
  0xea   :  { %1150 = vmatpush.msrb.mxu3 %v652_v6  ;;  %1130 = vmatpush.msrb.mxu2 %v524_v16  ;;  %v788_v25 = vld [vmem:[#allocation10 + $0x8c8] sm:$0xff]  ;;  %v701_v6 = vld [vmem:[#allocation10 + $0x610] sm:$0xff] }
  0xeb   :  { %1190 = vmatpush.msra.mxu1 %v908_v21  ;;  %v892_v26 = vld [vmem:[#allocation10 + $0xc08] sm:$0xff]  ;;  %1169 = vmatpush.msra.mxu0 %v788_v25  ;;  %v981_v12 = vld [vmem:[#allocation10 + $0xed0] sm:$0xff] }
  0xec   :  { %1151 = vmatpush.msrb.mxu3 %v644_v9  ;;  %1131 = vmatpush.msrb.mxu2 %v516_v19  ;;  %v780_v27 = vld [vmem:[#allocation10 + $0x888] sm:$0xff]  ;;  %v693_v9 = vld [vmem:[#allocation10 + $0x5d0] sm:$0xff] }
  0xed   :  { %1191 = vmatpush.msra.mxu1 %v900_v24  ;;  %1170 = vmatpush.msra.mxu0 %v780_v27  ;;  %v772_v28 = vld [vmem:[#allocation10 + $0x848] sm:$0xff]  ;;  %v685_v14 = vld [vmem:[#allocation10 + $0x590] sm:$0xff] }
  0xee   :  { %1152 = vmatpush.msrb.mxu3 %v636_v13  ;;  %1132 = vmatpush.msrb.mxu2 %v508_v22  ;;  %v764_v29 = vld [vmem:[#allocation10 + $0x808] sm:$0xff]  ;;  %v581_v13 = vld [vmem:[#allocation10 + $0x250] sm:$0xff] }
  0xef   :  { %1192 = vmatpush.msra.mxu1 %v892_v26  ;;  %1171 = vmatpush.msra.mxu0 %v772_v28  ;;  %v869_v15 = vld [vmem:[#allocation10 + $0xb50] sm:$0xff] }
  0xf0   :  { %v973_v16 = vld [vmem:[#allocation10 + $0xe90] sm:$0xff] }
  0xf1   :  { %1172 = vmatpush.msra.mxu0 %v764_v29  ;;  %v573_v17 = vld [vmem:[#allocation10 + $0x210] sm:$0xff] }
  0xf2   :  { %v677_v18 = vld [vmem:[#allocation10 + $0x550] sm:$0xff] }
  0xf3   :  { %v861_v19 = vld [vmem:[#allocation10 + $0xb10] sm:$0xff] }
  0xf4   :  { %v965_v20 = vld [vmem:[#allocation10 + $0xe50] sm:$0xff] }
  0xf5   :  { %v565_v21 = vld [vmem:[#allocation10 + $0x1d0] sm:$0xff] }
  0xf6   :  { %v669_v22 = vld [vmem:[#allocation10 + $0x510] sm:$0xff] }
  0xf7   :  { %v853_v23 = vld [vmem:[#allocation10 + $0xad0] sm:$0xff] }
  0xf8   :  { %v957_v24 = vld [vmem:[#allocation10 + $0xe10] sm:$0xff] }
  0xf9   :  { %v557_v25 = vld [vmem:[#allocation10 + $0x190] sm:$0xff] }
  0xfa   :  { %v661_v26 = vld [vmem:[#allocation10 + $0x4d0] sm:$0xff] }
  0xfb   :  { %v845_v27 = vld [vmem:[#allocation10 + $0xa90] sm:$0xff] }
  0xfc   :  { %v949_v28 = vld [vmem:[#allocation10 + $0xdd0] sm:$0xff] }
  0xfd   :  { %v549_v29 = vld [vmem:[#allocation10 + $0x150] sm:$0xff] }
 0x129   :  { %v420_v33 = vpop.f32.mrf.mxu1 }
 0x12a   :  { %v400_v32 = vpop.f32.mrf.mxu0 }
 0x12b   :  { %v401_v34 = vadd.f32 %v400_v32, %v336_v31  ;;  %v837_v31 = vld [vmem:[#allocation10 + $0xa50] sm:$0xff] }
 0x12c   :  { %v941_v32 = vld [vmem:[#allocation10 + $0xd90] sm:$0xff] }
 0x12d   :  { %v421_v36 = vadd.f32 %v420_v33, %v401_v34  ;;  %v541_v33 = vld [vmem:[#allocation10 + $0x110] sm:$0xff] }
 0x12e   :  { %v645_v34 = vld [vmem:[#allocation10 + $0x450] sm:$0xff] }
 0x12f   :  { %v2057_v37 = vmax.f32 %v421_v36, 0.0  ;;  %v380_v39 = vpop.f32.mrf.mxu3  ;;  %v933_v36 = vld [vmem:[#allocation10 + $0xd50] sm:$0xff] }
 0x130   :  { %v360_v38 = vpop.f32.mrf.mxu2 }
 0x131   :  { %v361_v42 = vadd.f32 %v360_v38, %v335_v35  ;;  %1073 = vmatmul.f32.vlgmr.msra.gmra.mxu3 %v2057_v37  ;;  %v500_v49 = vpop.f32.mrf.mxu1  ;;  %v829_v35 = vld [vmem:[#allocation10 + $0xa10] sm:$0xff] }
 0x132   :  { %1217 = vmatpush.msra.mxu3 %v757_v40  ;;  %v480_v45 = vpop.f32.mrf.mxu0  ;;  %v533_v38 = vld [vmem:[#allocation10 + $0xd0] sm:$0xff] }
 0x133   :  { %v381_v44 = vadd.f32 %v380_v39, %v361_v42  ;;  %v481_v46 = vadd.f32 %v480_v45, %v338_v41  ;;  %v637_v39 = vld [vmem:[#allocation10 + $0x410] sm:$0xff]  ;;  %v758_v42 = vld [vmem:[#allocation10 + $0x7d8] sm:$0xff] }
 0x134   :  { %1218 = vmatpush.msra.mxu3 %v749_v43  ;;  %v821_v40 = vld [vmem:[#allocation10 + $0x9d0] sm:$0xff] }
 0x135   :  { %v2060_v48 = vmax.f32 %v381_v44, 0.0  ;;  %v501_v52 = vadd.f32 %v500_v49, %v481_v46  ;;  %v925_v41 = vld [vmem:[#allocation10 + $0xd10] sm:$0xff]  ;;  %v750_v46 = vld [vmem:[#allocation10 + $0x798] sm:$0xff] }
 0x136   :  { %1219 = vmatpush.msra.mxu3 %v741_v47  ;;  %v525_v43 = vld [vmem:[#allocation10 + $0x90] sm:$0xff] }
 0x137   :  { %1053 = vmatmul.f32.vlgmr.msra.gmra.mxu2 %v2060_v48  ;;  %v2063_v54 = vmax.f32 %v501_v52, 0.0  ;;  %v460_v60 = vpop.f32.mrf.mxu3  ;;  %v813_v44 = vld [vmem:[#allocation10 + $0x990] sm:$0xff] }
 0x138   :  { %1197 = vmatpush.msra.mxu2 %v629_v50  ;;  %v440_v55 = vpop.f32.mrf.mxu2  ;;  %1220 = vmatpush.msra.mxu3 %v733_v53  ;;  %v917_v45 = vld [vmem:[#allocation10 + $0xcd0] sm:$0xff] }
 0x139   :  { %v441_v58 = vadd.f32 %v440_v55, %v337_v51  ;;  %1113 = vmatmul.f32.vlgmr.msrb.gmra.mxu1 %v2063_v54  ;;  %1153 = vmatmul.f32.vlgmr.msrb.gmra.mxu3 %v2057_v37  ;;  %v517_v47 = vld [vmem:[#allocation10 + $0x50] sm:$0xff]  ;;  %v742_v51 = vld [vmem:[#allocation10 + $0x758] sm:$0xff] }
 0x13a   :  { %1198 = vmatpush.msra.mxu2 %v621_v56  ;;  %1221 = vmatpush.msra.mxu3 %v725_v57  ;;  %v805_v49 = vld [vmem:[#allocation10 + $0x950] sm:$0xff]  ;;  %v734_v56 = vld [vmem:[#allocation10 + $0x718] sm:$0xff] }
 0x13b   :  { %v461_v63 = vadd.f32 %v460_v60, %v441_v58  ;;  %1257 = vmatpush.msrb.mxu1 %v1013_v59  ;;  %v909_v50 = vld [vmem:[#allocation10 + $0xc90] sm:$0xff]  ;;  %v630_v57 = vld [vmem:[#allocation10 + $0x3d8] sm:$0xff] }
 0x13c   :  { %1199 = vmatpush.msra.mxu2 %v613_v61  ;;  %1222 = vmatpush.msra.mxu3 %v717_v62  ;;  %v509_v52 = vld [vmem:[#allocation10 + $0x10] sm:$0xff]  ;;  %v726_v60 = vld [vmem:[#allocation10 + $0x6d8] sm:$0xff] }
 0x13d   :  { %v2067_v4 = vmax.f32 %v461_v63, 0.0  ;;  %1258 = vmatpush.msrb.mxu1 %v1005_v1  ;;  %v797_v53 = vld [vmem:[#allocation10 + $0x910] sm:$0xff]  ;;  %v622_v61 = vld [vmem:[#allocation10 + $0x398] sm:$0xff] }
 0x13e   :  { %1200 = vmatpush.msra.mxu2 %v605_v2  ;;  %1223 = vmatpush.msra.mxu3 %v709_v3  ;;  %v901_v55 = vld [vmem:[#allocation10 + $0xc50] sm:$0xff]  ;;  %v1014_v62 = vld [vmem:[#allocation10 + $0xfd8] sm:$0xff] }
 0x13f   :  { %1259 = vmatpush.msrb.mxu1 %v997_v5  ;;  %1093 = vmatmul.f32.vlgmr.msrb.gmra.mxu0 %v2067_v4  ;;  %v789_v58 = vld [vmem:[#allocation10 + $0x8d0] sm:$0xff]  ;;  %v614_v1 = vld [vmem:[#allocation10 + $0x358] sm:$0xff] }
 0x140   :  { %1133 = vmatmul.f32.vlgmr.msrb.gmra.mxu2 %v2060_v48  ;;  %1224 = vmatpush.msra.mxu3 %v701_v6  ;;  %v893_v59 = vld [vmem:[#allocation10 + $0xc10] sm:$0xff]  ;;  %v718_v2 = vld [vmem:[#allocation10 + $0x698] sm:$0xff] }
 0x141   :  { %1201 = vmatpush.msra.mxu2 %v597_v0  ;;  %1237 = vmatpush.msrb.mxu0 %v885_v7  ;;  %v781_v63 = vld [vmem:[#allocation10 + $0x890] sm:$0xff]  ;;  %v1006_v3 = vld [vmem:[#allocation10 + $0xf98] sm:$0xff] }
 0x142   :  { %1260 = vmatpush.msrb.mxu1 %v989_v8  ;;  %1225 = vmatpush.msra.mxu3 %v693_v9  ;;  %v773_v5 = vld [vmem:[#allocation10 + $0x850] sm:$0xff]  ;;  %v606_v6 = vld [vmem:[#allocation10 + $0x318] sm:$0xff] }
 0x143   :  { %1193 = vmatmul.f32.vlgmr.msra.gmra.mxu1 %v2063_v54  ;;  %1202 = vmatpush.msra.mxu2 %v589_v10  ;;  %v710_v0 = vld [vmem:[#allocation10 + $0x658] sm:$0xff]  ;;  %v765_v8 = vld [vmem:[#allocation10 + $0x810] sm:$0xff] }
 0x144   :  { %1238 = vmatpush.msrb.mxu0 %v877_v11  ;;  %1261 = vmatpush.msrb.mxu1 %v981_v12  ;;  %v998_v7 = vld [vmem:[#allocation10 + $0xf58] sm:$0xff] }
 0x145   :  { %1203 = vmatpush.msra.mxu2 %v581_v13  ;;  %1226 = vmatpush.msra.mxu3 %v685_v14  ;;  %v598_v9 = vld [vmem:[#allocation10 + $0x2d8] sm:$0xff] }
 0x146   :  { %1239 = vmatpush.msrb.mxu0 %v869_v15  ;;  %1262 = vmatpush.msrb.mxu1 %v973_v16  ;;  %v702_v10 = vld [vmem:[#allocation10 + $0x618] sm:$0xff] }
 0x147   :  { %1204 = vmatpush.msra.mxu2 %v573_v17  ;;  %1227 = vmatpush.msra.mxu3 %v677_v18  ;;  %v886_v11 = vld [vmem:[#allocation10 + $0xbd8] sm:$0xff] }
 0x148   :  { %1240 = vmatpush.msrb.mxu0 %v861_v19  ;;  %1263 = vmatpush.msrb.mxu1 %v965_v20  ;;  %v990_v12 = vld [vmem:[#allocation10 + $0xf18] sm:$0xff] }
 0x149   :  { %1173 = vmatmul.f32.vlgmr.msra.gmra.mxu0 %v2067_v4  ;;  %1205 = vmatpush.msra.mxu2 %v565_v21  ;;  %v590_v13 = vld [vmem:[#allocation10 + $0x298] sm:$0xff] }
 0x14a   :  { %1228 = vmatpush.msra.mxu3 %v669_v22  ;;  %1241 = vmatpush.msrb.mxu0 %v853_v23  ;;  %v694_v14 = vld [vmem:[#allocation10 + $0x5d8] sm:$0xff] }
 0x14b   :  { %1264 = vmatpush.msrb.mxu1 %v957_v24  ;;  %1206 = vmatpush.msra.mxu2 %v557_v25  ;;  %v878_v15 = vld [vmem:[#allocation10 + $0xb98] sm:$0xff] }
 0x14c   :  { %1229 = vmatpush.msra.mxu3 %v661_v26  ;;  %1242 = vmatpush.msrb.mxu0 %v845_v27  ;;  %v982_v16 = vld [vmem:[#allocation10 + $0xed8] sm:$0xff] }
 0x14d   :  { %1265 = vmatpush.msrb.mxu1 %v949_v28  ;;  %1207 = vmatpush.msra.mxu2 %v549_v29  ;;  %v582_v17 = vld [vmem:[#allocation10 + $0x258] sm:$0xff] }
 0x14e   :  { %1230 = vmatpush.msra.mxu3 %v653_v30  ;;  %1243 = vmatpush.msrb.mxu0 %v837_v31  ;;  %v686_v18 = vld [vmem:[#allocation10 + $0x598] sm:$0xff] }
 0x14f   :  { %1266 = vmatpush.msrb.mxu1 %v941_v32  ;;  %1208 = vmatpush.msra.mxu2 %v541_v33  ;;  %v870_v19 = vld [vmem:[#allocation10 + $0xb58] sm:$0xff] }
 0x150   :  { %1231 = vmatpush.msra.mxu3 %v645_v34  ;;  %1244 = vmatpush.msrb.mxu0 %v829_v35  ;;  %v974_v20 = vld [vmem:[#allocation10 + $0xe98] sm:$0xff] }
 0x151   :  { %1267 = vmatpush.msrb.mxu1 %v933_v36  ;;  %1209 = vmatpush.msra.mxu2 %v533_v38  ;;  %v574_v21 = vld [vmem:[#allocation10 + $0x218] sm:$0xff] }
 0x152   :  { %1232 = vmatpush.msra.mxu3 %v637_v39  ;;  %1245 = vmatpush.msrb.mxu0 %v821_v40  ;;  %v678_v22 = vld [vmem:[#allocation10 + $0x558] sm:$0xff] }
 0x153   :  { %1268 = vmatpush.msrb.mxu1 %v925_v41  ;;  %1233 = vmatmul.f32.vlgmr.msra.gmra.mxu3 %v2057_v37  ;;  %v862_v23 = vld [vmem:[#allocation10 + $0xb18] sm:$0xff] }
 0x154   :  { %1297 = vmatpush.msrb.mxu3 %v758_v42  ;;  %1210 = vmatpush.msra.mxu2 %v525_v43  ;;  %v966_v24 = vld [vmem:[#allocation10 + $0xe58] sm:$0xff] }
 0x155   :  { %1246 = vmatpush.msrb.mxu0 %v813_v44  ;;  %1269 = vmatpush.msrb.mxu1 %v917_v45  ;;  %v566_v25 = vld [vmem:[#allocation10 + $0x1d8] sm:$0xff] }
 0x156   :  { %1298 = vmatpush.msrb.mxu3 %v750_v46  ;;  %1211 = vmatpush.msra.mxu2 %v517_v47  ;;  %v670_v26 = vld [vmem:[#allocation10 + $0x518] sm:$0xff]  ;;  %v759_v46 = vld [vmem:[#allocation10 + $0x7e0] sm:$0xff] }
 0x157   :  { %1247 = vmatpush.msrb.mxu0 %v805_v49  ;;  %1270 = vmatpush.msrb.mxu1 %v909_v50  ;;  %v854_v27 = vld [vmem:[#allocation10 + $0xad8] sm:$0xff] }
 0x158   :  { %1299 = vmatpush.msrb.mxu3 %v742_v51  ;;  %1212 = vmatpush.msra.mxu2 %v509_v52  ;;  %v958_v28 = vld [vmem:[#allocation10 + $0xe18] sm:$0xff]  ;;  %v751_v51 = vld [vmem:[#allocation10 + $0x7a0] sm:$0xff] }
 0x159   :  { %1248 = vmatpush.msrb.mxu0 %v797_v53  ;;  %1271 = vmatpush.msrb.mxu1 %v901_v55  ;;  %v558_v29 = vld [vmem:[#allocation10 + $0x198] sm:$0xff] }
 0x15a   :  { %1213 = vmatmul.f32.vlgmr.msra.gmra.mxu2 %v2060_v48  ;;  %1300 = vmatpush.msrb.mxu3 %v734_v56  ;;  %v662_v30 = vld [vmem:[#allocation10 + $0x4d8] sm:$0xff]  ;;  %v743_v56 = vld [vmem:[#allocation10 + $0x760] sm:$0xff] }
 0x15b   :  { %1277 = vmatpush.msrb.mxu2 %v630_v57  ;;  %1249 = vmatpush.msrb.mxu0 %v789_v58  ;;  %v846_v31 = vld [vmem:[#allocation10 + $0xa98] sm:$0xff] }
 0x15c   :  { %1272 = vmatpush.msrb.mxu1 %v893_v59  ;;  %1301 = vmatpush.msrb.mxu3 %v726_v60  ;;  %v950_v32 = vld [vmem:[#allocation10 + $0xdd8] sm:$0xff]  ;;  %v735_v60 = vld [vmem:[#allocation10 + $0x720] sm:$0xff] }
 0x15d   :  { %1273 = vmatmul.f32.vlgmr.msrb.gmra.mxu1 %v2063_v54  ;;  %1278 = vmatpush.msrb.mxu2 %v622_v61  ;;  %v550_v33 = vld [vmem:[#allocation10 + $0x158] sm:$0xff]  ;;  %v631_v61 = vld [vmem:[#allocation10 + $0x3e0] sm:$0xff] }
 0x15e   :  { %1337 = vmatpush.msra.mxu1 %v1014_v62  ;;  %1250 = vmatpush.msrb.mxu0 %v781_v63  ;;  %v654_v34 = vld [vmem:[#allocation10 + $0x498] sm:$0xff] }
 0x15f   :  { %1279 = vmatpush.msrb.mxu2 %v614_v1  ;;  %1302 = vmatpush.msrb.mxu3 %v718_v2  ;;  %v838_v35 = vld [vmem:[#allocation10 + $0xa58] sm:$0xff]  ;;  %v727_v1 = vld [vmem:[#allocation10 + $0x6e0] sm:$0xff] }
 0x160   :  { %1338 = vmatpush.msra.mxu1 %v1006_v3  ;;  %1251 = vmatpush.msrb.mxu0 %v773_v5  ;;  %v942_v36 = vld [vmem:[#allocation10 + $0xd98] sm:$0xff]  ;;  %v623_v2 = vld [vmem:[#allocation10 + $0x3a0] sm:$0xff] }
 0x161   :  { %1280 = vmatpush.msrb.mxu2 %v606_v6  ;;  %1303 = vmatpush.msrb.mxu3 %v710_v0  ;;  %v542_v38 = vld [vmem:[#allocation10 + $0x118] sm:$0xff]  ;;  %v1015_v3 = vld [vmem:[#allocation10 + $0xfe0] sm:$0xff] }
 0x162   :  { %1339 = vmatpush.msra.mxu1 %v998_v7  ;;  %1252 = vmatpush.msrb.mxu0 %v765_v8  ;;  %v646_v39 = vld [vmem:[#allocation10 + $0x458] sm:$0xff]  ;;  %v615_v6 = vld [vmem:[#allocation10 + $0x360] sm:$0xff] }
 0x163   :  { %1253 = vmatmul.f32.vlgmr.msrb.gmra.mxu0 %v2067_v4  ;;  %1281 = vmatpush.msrb.mxu2 %v598_v9  ;;  %v830_v40 = vld [vmem:[#allocation10 + $0xa18] sm:$0xff]  ;;  %v719_v0 = vld [vmem:[#allocation10 + $0x6a0] sm:$0xff] }
 0x164   :  { %1304 = vmatpush.msrb.mxu3 %v702_v10  ;;  %1317 = vmatpush.msra.mxu0 %v886_v11  ;;  %v934_v41 = vld [vmem:[#allocation10 + $0xd58] sm:$0xff]  ;;  %v1007_v7 = vld [vmem:[#allocation10 + $0xfa0] sm:$0xff] }
 0x165   :  { %1340 = vmatpush.msra.mxu1 %v990_v12  ;;  %1282 = vmatpush.msrb.mxu2 %v590_v13  ;;  %v534_v42 = vld [vmem:[#allocation10 + $0xd8] sm:$0xff]  ;;  %v607_v9 = vld [vmem:[#allocation10 + $0x320] sm:$0xff] }
 0x166   :  { %1305 = vmatpush.msrb.mxu3 %v694_v14  ;;  %1318 = vmatpush.msra.mxu0 %v878_v15  ;;  %v638_v43 = vld [vmem:[#allocation10 + $0x418] sm:$0xff]  ;;  %v711_v10 = vld [vmem:[#allocation10 + $0x660] sm:$0xff] }
 0x167   :  { %1341 = vmatpush.msra.mxu1 %v982_v16  ;;  %1283 = vmatpush.msrb.mxu2 %v582_v17  ;;  %v822_v44 = vld [vmem:[#allocation10 + $0x9d8] sm:$0xff]  ;;  %v999_v11 = vld [vmem:[#allocation10 + $0xf60] sm:$0xff] }
 0x168   :  { %1306 = vmatpush.msrb.mxu3 %v686_v18  ;;  %1319 = vmatpush.msra.mxu0 %v870_v19  ;;  %v926_v45 = vld [vmem:[#allocation10 + $0xd18] sm:$0xff]  ;;  %v599_v13 = vld [vmem:[#allocation10 + $0x2e0] sm:$0xff] }
 0x169   :  { %1342 = vmatpush.msra.mxu1 %v974_v20  ;;  %1284 = vmatpush.msrb.mxu2 %v574_v21  ;;  %v526_v47 = vld [vmem:[#allocation10 + $0x98] sm:$0xff]  ;;  %v703_v14 = vld [vmem:[#allocation10 + $0x620] sm:$0xff] }
 0x16a   :  { %1307 = vmatpush.msrb.mxu3 %v678_v22  ;;  %1320 = vmatpush.msra.mxu0 %v862_v23  ;;  %v814_v49 = vld [vmem:[#allocation10 + $0x998] sm:$0xff]  ;;  %v887_v15 = vld [vmem:[#allocation10 + $0xbe0] sm:$0xff] }
 0x16b   :  { %1343 = vmatpush.msra.mxu1 %v966_v24  ;;  %1285 = vmatpush.msrb.mxu2 %v566_v25  ;;  %v918_v50 = vld [vmem:[#allocation10 + $0xcd8] sm:$0xff]  ;;  %v991_v16 = vld [vmem:[#allocation10 + $0xf20] sm:$0xff] }
 0x16c   :  { %1308 = vmatpush.msrb.mxu3 %v670_v26  ;;  %1321 = vmatpush.msra.mxu0 %v854_v27  ;;  %v518_v52 = vld [vmem:[#allocation10 + $0x58] sm:$0xff]  ;;  %v591_v17 = vld [vmem:[#allocation10 + $0x2a0] sm:$0xff] }
 0x16d   :  { %1344 = vmatpush.msra.mxu1 %v958_v28  ;;  %1286 = vmatpush.msrb.mxu2 %v558_v29  ;;  %v806_v53 = vld [vmem:[#allocation10 + $0x958] sm:$0xff]  ;;  %v695_v18 = vld [vmem:[#allocation10 + $0x5e0] sm:$0xff] }
 0x16e   :  { %1309 = vmatpush.msrb.mxu3 %v662_v30  ;;  %1322 = vmatpush.msra.mxu0 %v846_v31  ;;  %v910_v55 = vld [vmem:[#allocation10 + $0xc98] sm:$0xff]  ;;  %v879_v19 = vld [vmem:[#allocation10 + $0xba0] sm:$0xff] }
 0x16f   :  { %1345 = vmatpush.msra.mxu1 %v950_v32  ;;  %1287 = vmatpush.msrb.mxu2 %v550_v33  ;;  %v510_v57 = vld [vmem:[#allocation10 + $0x18] sm:$0xff]  ;;  %v983_v20 = vld [vmem:[#allocation10 + $0xee0] sm:$0xff] }
 0x170   :  { %1310 = vmatpush.msrb.mxu3 %v654_v34  ;;  %1323 = vmatpush.msra.mxu0 %v838_v35  ;;  %v798_v58 = vld [vmem:[#allocation10 + $0x918] sm:$0xff]  ;;  %v583_v21 = vld [vmem:[#allocation10 + $0x260] sm:$0xff] }
 0x171   :  { %1346 = vmatpush.msra.mxu1 %v942_v36  ;;  %1288 = vmatpush.msrb.mxu2 %v542_v38  ;;  %v902_v59 = vld [vmem:[#allocation10 + $0xc58] sm:$0xff]  ;;  %v687_v22 = vld [vmem:[#allocation10 + $0x5a0] sm:$0xff] }
 0x172   :  { %1311 = vmatpush.msrb.mxu3 %v646_v39  ;;  %1324 = vmatpush.msra.mxu0 %v830_v40  ;;  %v790_v62 = vld [vmem:[#allocation10 + $0x8d8] sm:$0xff]  ;;  %v871_v23 = vld [vmem:[#allocation10 + $0xb60] sm:$0xff] }
 0x173   :  { %1347 = vmatpush.msra.mxu1 %v934_v41  ;;  %1289 = vmatpush.msrb.mxu2 %v534_v42  ;;  %v894_v63 = vld [vmem:[#allocation10 + $0xc18] sm:$0xff]  ;;  %v975_v24 = vld [vmem:[#allocation10 + $0xea0] sm:$0xff] }
 0x174   :  { %1312 = vmatpush.msrb.mxu3 %v638_v43  ;;  %1325 = vmatpush.msra.mxu0 %v822_v44  ;;  %v782_v5 = vld [vmem:[#allocation10 + $0x898] sm:$0xff]  ;;  %v575_v25 = vld [vmem:[#allocation10 + $0x220] sm:$0xff] }
 0x175   :  { %1348 = vmatpush.msra.mxu1 %v926_v45  ;;  %1313 = vmatmul.f32.vlgmr.msrb.gmra.mxu3 %v2057_v37  ;;  %v774_v8 = vld [vmem:[#allocation10 + $0x858] sm:$0xff]  ;;  %v679_v26 = vld [vmem:[#allocation10 + $0x560] sm:$0xff] }
 0x176   :  { %1377 = vmatpush.msra.mxu3 %v759_v46  ;;  %1290 = vmatpush.msrb.mxu2 %v526_v47  ;;  %v766_v12 = vld [vmem:[#allocation10 + $0x818] sm:$0xff]  ;;  %v863_v27 = vld [vmem:[#allocation10 + $0xb20] sm:$0xff] }
 0x177   :  { %1326 = vmatpush.msra.mxu0 %v814_v49  ;;  %1349 = vmatpush.msra.mxu1 %v918_v50  ;;  %v967_v28 = vld [vmem:[#allocation10 + $0xe60] sm:$0xff] }
 0x178   :  { %1378 = vmatpush.msra.mxu3 %v751_v51  ;;  %1291 = vmatpush.msrb.mxu2 %v518_v52  ;;  %v567_v29 = vld [vmem:[#allocation10 + $0x1e0] sm:$0xff]  ;;  %v760_v51 = vld [vmem:[#allocation10 + $0x7e8] sm:$0xff] }
 0x179   :  { %1327 = vmatpush.msra.mxu0 %v806_v53  ;;  %1350 = vmatpush.msra.mxu1 %v910_v55  ;;  %v671_v30 = vld [vmem:[#allocation10 + $0x520] sm:$0xff] }
 0x17a   :  { %1379 = vmatpush.msra.mxu3 %v743_v56  ;;  %1292 = vmatpush.msrb.mxu2 %v510_v57  ;;  %v855_v31 = vld [vmem:[#allocation10 + $0xae0] sm:$0xff]  ;;  %v752_v56 = vld [vmem:[#allocation10 + $0x7a8] sm:$0xff] }
 0x17b   :  { %1328 = vmatpush.msra.mxu0 %v798_v58  ;;  %1351 = vmatpush.msra.mxu1 %v902_v59  ;;  %v959_v32 = vld [vmem:[#allocation10 + $0xe20] sm:$0xff] }
 0x17c   :  { %1293 = vmatmul.f32.vlgmr.msrb.gmra.mxu2 %v2060_v48  ;;  %1380 = vmatpush.msra.mxu3 %v735_v60  ;;  %v559_v33 = vld [vmem:[#allocation10 + $0x1a0] sm:$0xff]  ;;  %v744_v60 = vld [vmem:[#allocation10 + $0x768] sm:$0xff] }
 0x17d   :  { %1357 = vmatpush.msra.mxu2 %v631_v61  ;;  %1329 = vmatpush.msra.mxu0 %v790_v62  ;;  %v663_v34 = vld [vmem:[#allocation10 + $0x4e0] sm:$0xff] }
 0x17e   :  { %1352 = vmatpush.msra.mxu1 %v894_v63  ;;  %1381 = vmatpush.msra.mxu3 %v727_v1  ;;  %v847_v35 = vld [vmem:[#allocation10 + $0xaa0] sm:$0xff]  ;;  %v736_v1 = vld [vmem:[#allocation10 + $0x728] sm:$0xff] }
 0x17f   :  { %1353 = vmatmul.f32.vlgmr.msra.gmra.mxu1 %v2063_v54  ;;  %1358 = vmatpush.msra.mxu2 %v623_v2  ;;  %v951_v36 = vld [vmem:[#allocation10 + $0xde0] sm:$0xff]  ;;  %v632_v2 = vld [vmem:[#allocation10 + $0x3e8] sm:$0xff] }
 0x180   :  { %1417 = vmatpush.msrb.mxu1 %v1015_v3  ;;  %1330 = vmatpush.msra.mxu0 %v782_v5  ;;  %v551_v38 = vld [vmem:[#allocation10 + $0x160] sm:$0xff] }
 0x181   :  { %1359 = vmatpush.msra.mxu2 %v615_v6  ;;  %1382 = vmatpush.msra.mxu3 %v719_v0  ;;  %v655_v39 = vld [vmem:[#allocation10 + $0x4a0] sm:$0xff]  ;;  %v728_v6 = vld [vmem:[#allocation10 + $0x6e8] sm:$0xff] }
 0x182   :  { %1418 = vmatpush.msrb.mxu1 %v1007_v7  ;;  %1331 = vmatpush.msra.mxu0 %v774_v8  ;;  %v839_v40 = vld [vmem:[#allocation10 + $0xa60] sm:$0xff]  ;;  %v624_v0 = vld [vmem:[#allocation10 + $0x3a8] sm:$0xff] }
 0x183   :  { %1360 = vmatpush.msra.mxu2 %v607_v9  ;;  %1383 = vmatpush.msra.mxu3 %v711_v10  ;;  %v943_v41 = vld [vmem:[#allocation10 + $0xda0] sm:$0xff]  ;;  %v1016_v7 = vld [vmem:[#allocation10 + $0xfe8] sm:$0xff] }
 0x184   :  { %1419 = vmatpush.msrb.mxu1 %v999_v11  ;;  %1332 = vmatpush.msra.mxu0 %v766_v12  ;;  %v543_v42 = vld [vmem:[#allocation10 + $0x120] sm:$0xff]  ;;  %v616_v9 = vld [vmem:[#allocation10 + $0x368] sm:$0xff] }
 0x185   :  { %1333 = vmatmul.f32.vlgmr.msra.gmra.mxu0 %v2067_v4  ;;  %1361 = vmatpush.msra.mxu2 %v599_v13  ;;  %v647_v43 = vld [vmem:[#allocation10 + $0x460] sm:$0xff]  ;;  %v720_v10 = vld [vmem:[#allocation10 + $0x6a8] sm:$0xff] }
 0x186   :  { %1384 = vmatpush.msra.mxu3 %v703_v14  ;;  %1397 = vmatpush.msrb.mxu0 %v887_v15  ;;  %v831_v44 = vld [vmem:[#allocation10 + $0xa20] sm:$0xff]  ;;  %v1008_v11 = vld [vmem:[#allocation10 + $0xfa8] sm:$0xff] }
 0x187   :  { %1420 = vmatpush.msrb.mxu1 %v991_v16  ;;  %1362 = vmatpush.msra.mxu2 %v591_v17  ;;  %v935_v45 = vld [vmem:[#allocation10 + $0xd60] sm:$0xff]  ;;  %v608_v13 = vld [vmem:[#allocation10 + $0x328] sm:$0xff] }
 0x188   :  { %1385 = vmatpush.msra.mxu3 %v695_v18  ;;  %1398 = vmatpush.msrb.mxu0 %v879_v19  ;;  %v535_v46 = vld [vmem:[#allocation10 + $0xe0] sm:$0xff]  ;;  %v712_v14 = vld [vmem:[#allocation10 + $0x668] sm:$0xff] }
 0x189   :  { %1421 = vmatpush.msrb.mxu1 %v983_v20  ;;  %1363 = vmatpush.msra.mxu2 %v583_v21  ;;  %v639_v47 = vld [vmem:[#allocation10 + $0x420] sm:$0xff]  ;;  %v1000_v15 = vld [vmem:[#allocation10 + $0xf68] sm:$0xff] }
 0x18a   :  { %1386 = vmatpush.msra.mxu3 %v687_v22  ;;  %1399 = vmatpush.msrb.mxu0 %v871_v23  ;;  %v823_v49 = vld [vmem:[#allocation10 + $0x9e0] sm:$0xff]  ;;  %v600_v17 = vld [vmem:[#allocation10 + $0x2e8] sm:$0xff] }
 0x18b   :  { %1422 = vmatpush.msrb.mxu1 %v975_v24  ;;  %1364 = vmatpush.msra.mxu2 %v575_v25  ;;  %v927_v50 = vld [vmem:[#allocation10 + $0xd20] sm:$0xff]  ;;  %v704_v18 = vld [vmem:[#allocation10 + $0x628] sm:$0xff] }
 0x18c   :  { %1387 = vmatpush.msra.mxu3 %v679_v26  ;;  %1400 = vmatpush.msrb.mxu0 %v863_v27  ;;  %v527_v52 = vld [vmem:[#allocation10 + $0xa0] sm:$0xff]  ;;  %v888_v19 = vld [vmem:[#allocation10 + $0xbe8] sm:$0xff] }
 0x18d   :  { %1423 = vmatpush.msrb.mxu1 %v967_v28  ;;  %1365 = vmatpush.msra.mxu2 %v567_v29  ;;  %v815_v53 = vld [vmem:[#allocation10 + $0x9a0] sm:$0xff]  ;;  %v992_v20 = vld [vmem:[#allocation10 + $0xf28] sm:$0xff] }
 0x18e   :  { %1388 = vmatpush.msra.mxu3 %v671_v30  ;;  %1401 = vmatpush.msrb.mxu0 %v855_v31  ;;  %v919_v55 = vld [vmem:[#allocation10 + $0xce0] sm:$0xff]  ;;  %v592_v21 = vld [vmem:[#allocation10 + $0x2a8] sm:$0xff] }
 0x18f   :  { %1424 = vmatpush.msrb.mxu1 %v959_v32  ;;  %1366 = vmatpush.msra.mxu2 %v559_v33  ;;  %v519_v57 = vld [vmem:[#allocation10 + $0x60] sm:$0xff]  ;;  %v696_v22 = vld [vmem:[#allocation10 + $0x5e8] sm:$0xff] }
 0x190   :  { %1389 = vmatpush.msra.mxu3 %v663_v34  ;;  %1402 = vmatpush.msrb.mxu0 %v847_v35  ;;  %v807_v58 = vld [vmem:[#allocation10 + $0x960] sm:$0xff]  ;;  %v880_v23 = vld [vmem:[#allocation10 + $0xba8] sm:$0xff] }
 0x191   :  { %1425 = vmatpush.msrb.mxu1 %v951_v36  ;;  %1367 = vmatpush.msra.mxu2 %v551_v38  ;;  %v911_v59 = vld [vmem:[#allocation10 + $0xca0] sm:$0xff]  ;;  %v984_v24 = vld [vmem:[#allocation10 + $0xee8] sm:$0xff] }
 0x192   :  { %1390 = vmatpush.msra.mxu3 %v655_v39  ;;  %1403 = vmatpush.msrb.mxu0 %v839_v40  ;;  %v511_v61 = vld [vmem:[#allocation10 + $0x20] sm:$0xff]  ;;  %v584_v25 = vld [vmem:[#allocation10 + $0x268] sm:$0xff] }
 0x193   :  { %1426 = vmatpush.msrb.mxu1 %v943_v41  ;;  %1368 = vmatpush.msra.mxu2 %v543_v42  ;;  %v799_v62 = vld [vmem:[#allocation10 + $0x920] sm:$0xff]  ;;  %v688_v26 = vld [vmem:[#allocation10 + $0x5a8] sm:$0xff] }
 0x194   :  { %1391 = vmatpush.msra.mxu3 %v647_v43  ;;  %1404 = vmatpush.msrb.mxu0 %v831_v44  ;;  %v903_v63 = vld [vmem:[#allocation10 + $0xc60] sm:$0xff]  ;;  %v872_v27 = vld [vmem:[#allocation10 + $0xb68] sm:$0xff] }
 0x195   :  { %1427 = vmatpush.msrb.mxu1 %v935_v45  ;;  %1369 = vmatpush.msra.mxu2 %v535_v46  ;;  %v791_v3 = vld [vmem:[#allocation10 + $0x8e0] sm:$0xff]  ;;  %v976_v28 = vld [vmem:[#allocation10 + $0xea8] sm:$0xff] }
 0x196   :  { %1392 = vmatpush.msra.mxu3 %v639_v47  ;;  %1405 = vmatpush.msrb.mxu0 %v823_v49  ;;  %v895_v5 = vld [vmem:[#allocation10 + $0xc20] sm:$0xff]  ;;  %v576_v29 = vld [vmem:[#allocation10 + $0x228] sm:$0xff] }
 0x197   :  { %1428 = vmatpush.msrb.mxu1 %v927_v50  ;;  %1393 = vmatmul.f32.vlgmr.msra.gmra.mxu3 %v2057_v37  ;;  %v783_v8 = vld [vmem:[#allocation10 + $0x8a0] sm:$0xff]  ;;  %v680_v30 = vld [vmem:[#allocation10 + $0x568] sm:$0xff] }
 0x198   :  { %1457 = vmatpush.msrb.mxu3 %v760_v51  ;;  %1370 = vmatpush.msra.mxu2 %v527_v52  ;;  %v775_v12 = vld [vmem:[#allocation10 + $0x860] sm:$0xff]  ;;  %v864_v31 = vld [vmem:[#allocation10 + $0xb28] sm:$0xff] }
 0x199   :  { %1406 = vmatpush.msrb.mxu0 %v815_v53  ;;  %1429 = vmatpush.msrb.mxu1 %v919_v55  ;;  %v767_v16 = vld [vmem:[#allocation10 + $0x820] sm:$0xff]  ;;  %v968_v32 = vld [vmem:[#allocation10 + $0xe68] sm:$0xff] }
 0x19a   :  { %1458 = vmatpush.msrb.mxu3 %v752_v56  ;;  %1371 = vmatpush.msra.mxu2 %v519_v57  ;;  %v568_v33 = vld [vmem:[#allocation10 + $0x1e8] sm:$0xff]  ;;  %v761_v56 = vld [vmem:[#allocation10 + $0x7f0] sm:$0xff] }
 0x19b   :  { %1407 = vmatpush.msrb.mxu0 %v807_v58  ;;  %1430 = vmatpush.msrb.mxu1 %v911_v59  ;;  %v672_v34 = vld [vmem:[#allocation10 + $0x528] sm:$0xff] }
 0x19c   :  { %1459 = vmatpush.msrb.mxu3 %v744_v60  ;;  %1372 = vmatpush.msra.mxu2 %v511_v61  ;;  %v856_v35 = vld [vmem:[#allocation10 + $0xae8] sm:$0xff]  ;;  %v753_v60 = vld [vmem:[#allocation10 + $0x7b0] sm:$0xff] }
 0x19d   :  { %1408 = vmatpush.msrb.mxu0 %v799_v62  ;;  %1431 = vmatpush.msrb.mxu1 %v903_v63  ;;  %v960_v36 = vld [vmem:[#allocation10 + $0xe28] sm:$0xff] }
 0x19e   :  { %1373 = vmatmul.f32.vlgmr.msra.gmra.mxu2 %v2060_v48  ;;  %1460 = vmatpush.msrb.mxu3 %v736_v1  ;;  %v560_v38 = vld [vmem:[#allocation10 + $0x1a8] sm:$0xff]  ;;  %v745_v1 = vld [vmem:[#allocation10 + $0x770] sm:$0xff] }
 0x19f   :  { %1437 = vmatpush.msrb.mxu2 %v632_v2  ;;  %1409 = vmatpush.msrb.mxu0 %v791_v3  ;;  %v664_v39 = vld [vmem:[#allocation10 + $0x4e8] sm:$0xff] }
 0x1a0   :  { %1432 = vmatpush.msrb.mxu1 %v895_v5  ;;  %1461 = vmatpush.msrb.mxu3 %v728_v6  ;;  %v848_v40 = vld [vmem:[#allocation10 + $0xaa8] sm:$0xff]  ;;  %v737_v6 = vld [vmem:[#allocation10 + $0x730] sm:$0xff] }
 0x1a1   :  { %1433 = vmatmul.f32.vlgmr.msrb.gmra.mxu1 %v2063_v54  ;;  %1438 = vmatpush.msrb.mxu2 %v624_v0  ;;  %v952_v41 = vld [vmem:[#allocation10 + $0xde8] sm:$0xff]  ;;  %v633_v0 = vld [vmem:[#allocation10 + $0x3f0] sm:$0xff] }
 0x1a2   :  { %1497 = vmatpush.msra.mxu1 %v1016_v7  ;;  %1410 = vmatpush.msrb.mxu0 %v783_v8  ;;  %v552_v42 = vld [vmem:[#allocation10 + $0x168] sm:$0xff] }
 0x1a3   :  { %1439 = vmatpush.msrb.mxu2 %v616_v9  ;;  %1462 = vmatpush.msrb.mxu3 %v720_v10  ;;  %v656_v43 = vld [vmem:[#allocation10 + $0x4a8] sm:$0xff]  ;;  %v729_v9 = vld [vmem:[#allocation10 + $0x6f0] sm:$0xff] }
 0x1a4   :  { %1498 = vmatpush.msra.mxu1 %v1008_v11  ;;  %1411 = vmatpush.msrb.mxu0 %v775_v12  ;;  %v840_v44 = vld [vmem:[#allocation10 + $0xa68] sm:$0xff]  ;;  %v625_v10 = vld [vmem:[#allocation10 + $0x3b0] sm:$0xff] }
 0x1a5   :  { %1440 = vmatpush.msrb.mxu2 %v608_v13  ;;  %1463 = vmatpush.msrb.mxu3 %v712_v14  ;;  %v944_v45 = vld [vmem:[#allocation10 + $0xda8] sm:$0xff]  ;;  %v1017_v11 = vld [vmem:[#allocation10 + $0xff0] sm:$0xff] }
 0x1a6   :  { %1499 = vmatpush.msra.mxu1 %v1000_v15  ;;  %1412 = vmatpush.msrb.mxu0 %v767_v16  ;;  %v544_v46 = vld [vmem:[#allocation10 + $0x128] sm:$0xff]  ;;  %v617_v13 = vld [vmem:[#allocation10 + $0x370] sm:$0xff] }
 0x1a7   :  { %1413 = vmatmul.f32.vlgmr.msrb.gmra.mxu0 %v2067_v4  ;;  %1441 = vmatpush.msrb.mxu2 %v600_v17  ;;  %v648_v47 = vld [vmem:[#allocation10 + $0x468] sm:$0xff]  ;;  %v721_v14 = vld [vmem:[#allocation10 + $0x6b0] sm:$0xff] }
 0x1a8   :  { %1464 = vmatpush.msrb.mxu3 %v704_v18  ;;  %1477 = vmatpush.msra.mxu0 %v888_v19  ;;  %v832_v49 = vld [vmem:[#allocation10 + $0xa28] sm:$0xff]  ;;  %v1009_v15 = vld [vmem:[#allocation10 + $0xfb0] sm:$0xff] }
 0x1a9   :  { %1500 = vmatpush.msra.mxu1 %v992_v20  ;;  %1442 = vmatpush.msrb.mxu2 %v592_v21  ;;  %v936_v50 = vld [vmem:[#allocation10 + $0xd68] sm:$0xff]  ;;  %v609_v17 = vld [vmem:[#allocation10 + $0x330] sm:$0xff] }
 0x1aa   :  { %1465 = vmatpush.msrb.mxu3 %v696_v22  ;;  %1478 = vmatpush.msra.mxu0 %v880_v23  ;;  %v536_v51 = vld [vmem:[#allocation10 + $0xe8] sm:$0xff]  ;;  %v713_v18 = vld [vmem:[#allocation10 + $0x670] sm:$0xff] }
 0x1ab   :  { %1501 = vmatpush.msra.mxu1 %v984_v24  ;;  %1443 = vmatpush.msrb.mxu2 %v584_v25  ;;  %v640_v52 = vld [vmem:[#allocation10 + $0x428] sm:$0xff]  ;;  %v1001_v19 = vld [vmem:[#allocation10 + $0xf70] sm:$0xff] }
 0x1ac   :  { %1466 = vmatpush.msrb.mxu3 %v688_v26  ;;  %1479 = vmatpush.msra.mxu0 %v872_v27  ;;  %v824_v53 = vld [vmem:[#allocation10 + $0x9e8] sm:$0xff]  ;;  %v601_v21 = vld [vmem:[#allocation10 + $0x2f0] sm:$0xff] }
 0x1ad   :  { %1502 = vmatpush.msra.mxu1 %v976_v28  ;;  %1444 = vmatpush.msrb.mxu2 %v576_v29  ;;  %v928_v55 = vld [vmem:[#allocation10 + $0xd28] sm:$0xff]  ;;  %v705_v22 = vld [vmem:[#allocation10 + $0x630] sm:$0xff] }
 0x1ae   :  { %1467 = vmatpush.msrb.mxu3 %v680_v30  ;;  %1480 = vmatpush.msra.mxu0 %v864_v31  ;;  %v528_v57 = vld [vmem:[#allocation10 + $0xa8] sm:$0xff]  ;;  %v889_v23 = vld [vmem:[#allocation10 + $0xbf0] sm:$0xff] }
 0x1af   :  { %1503 = vmatpush.msra.mxu1 %v968_v32  ;;  %1445 = vmatpush.msrb.mxu2 %v568_v33  ;;  %v816_v58 = vld [vmem:[#allocation10 + $0x9a8] sm:$0xff]  ;;  %v993_v24 = vld [vmem:[#allocation10 + $0xf30] sm:$0xff] }
 0x1b0   :  { %1468 = vmatpush.msrb.mxu3 %v672_v34  ;;  %1481 = vmatpush.msra.mxu0 %v856_v35  ;;  %v920_v59 = vld [vmem:[#allocation10 + $0xce8] sm:$0xff]  ;;  %v593_v25 = vld [vmem:[#allocation10 + $0x2b0] sm:$0xff] }
 0x1b1   :  { %1504 = vmatpush.msra.mxu1 %v960_v36  ;;  %1446 = vmatpush.msrb.mxu2 %v560_v38  ;;  %v520_v61 = vld [vmem:[#allocation10 + $0x68] sm:$0xff]  ;;  %v697_v26 = vld [vmem:[#allocation10 + $0x5f0] sm:$0xff] }
 0x1b2   :  { %1469 = vmatpush.msrb.mxu3 %v664_v39  ;;  %1482 = vmatpush.msra.mxu0 %v848_v40  ;;  %v808_v62 = vld [vmem:[#allocation10 + $0x968] sm:$0xff]  ;;  %v881_v27 = vld [vmem:[#allocation10 + $0xbb0] sm:$0xff] }
 0x1b3   :  { %1505 = vmatpush.msra.mxu1 %v952_v41  ;;  %1447 = vmatpush.msrb.mxu2 %v552_v42  ;;  %v912_v63 = vld [vmem:[#allocation10 + $0xca8] sm:$0xff]  ;;  %v985_v28 = vld [vmem:[#allocation10 + $0xef0] sm:$0xff] }
 0x1b4   :  { %1470 = vmatpush.msrb.mxu3 %v656_v43  ;;  %1483 = vmatpush.msra.mxu0 %v840_v44  ;;  %v512_v2 = vld [vmem:[#allocation10 + $0x28] sm:$0xff]  ;;  %v585_v29 = vld [vmem:[#allocation10 + $0x270] sm:$0xff] }
 0x1b5   :  { %1506 = vmatpush.msra.mxu1 %v944_v45  ;;  %1448 = vmatpush.msrb.mxu2 %v544_v46  ;;  %v800_v3 = vld [vmem:[#allocation10 + $0x928] sm:$0xff]  ;;  %v689_v30 = vld [vmem:[#allocation10 + $0x5b0] sm:$0xff] }
 0x1b6   :  { %1471 = vmatpush.msrb.mxu3 %v648_v47  ;;  %1484 = vmatpush.msra.mxu0 %v832_v49  ;;  %v904_v5 = vld [vmem:[#allocation10 + $0xc68] sm:$0xff]  ;;  %v873_v31 = vld [vmem:[#allocation10 + $0xb70] sm:$0xff] }
 0x1b7   :  { %1507 = vmatpush.msra.mxu1 %v936_v50  ;;  %1449 = vmatpush.msrb.mxu2 %v536_v51  ;;  %v792_v7 = vld [vmem:[#allocation10 + $0x8e8] sm:$0xff]  ;;  %v977_v32 = vld [vmem:[#allocation10 + $0xeb0] sm:$0xff] }
 0x1b8   :  { %1472 = vmatpush.msrb.mxu3 %v640_v52  ;;  %1485 = vmatpush.msra.mxu0 %v824_v53  ;;  %v896_v8 = vld [vmem:[#allocation10 + $0xc28] sm:$0xff]  ;;  %v577_v33 = vld [vmem:[#allocation10 + $0x230] sm:$0xff] }
 0x1b9   :  { %1508 = vmatpush.msra.mxu1 %v928_v55  ;;  %1473 = vmatmul.f32.vlgmr.msrb.gmra.mxu3 %v2057_v37  ;;  %v784_v12 = vld [vmem:[#allocation10 + $0x8a8] sm:$0xff]  ;;  %v681_v34 = vld [vmem:[#allocation10 + $0x570] sm:$0xff] }
 0x1ba   :  { %1537 = vmatpush.msra.mxu3 %v761_v56  ;;  %1450 = vmatpush.msrb.mxu2 %v528_v57  ;;  %v776_v16 = vld [vmem:[#allocation10 + $0x868] sm:$0xff]  ;;  %v865_v35 = vld [vmem:[#allocation10 + $0xb30] sm:$0xff] }
 0x1bb   :  { %1486 = vmatpush.msra.mxu0 %v816_v58  ;;  %1509 = vmatpush.msra.mxu1 %v920_v59  ;;  %v768_v20 = vld [vmem:[#allocation10 + $0x828] sm:$0xff]  ;;  %v969_v36 = vld [vmem:[#allocation10 + $0xe70] sm:$0xff] }
 0x1bc   :  { %1538 = vmatpush.msra.mxu3 %v753_v60  ;;  %1451 = vmatpush.msrb.mxu2 %v520_v61  ;;  %v569_v38 = vld [vmem:[#allocation10 + $0x1f0] sm:$0xff]  ;;  %v762_v60 = vld [vmem:[#allocation10 + $0x7f8] sm:$0xff] }
 0x1bd   :  { %1487 = vmatpush.msra.mxu0 %v808_v62  ;;  %1510 = vmatpush.msra.mxu1 %v912_v63  ;;  %v673_v39 = vld [vmem:[#allocation10 + $0x530] sm:$0xff] }
 0x1be   :  { %1539 = vmatpush.msra.mxu3 %v745_v1  ;;  %1452 = vmatpush.msrb.mxu2 %v512_v2  ;;  %v857_v40 = vld [vmem:[#allocation10 + $0xaf0] sm:$0xff]  ;;  %v754_v1 = vld [vmem:[#allocation10 + $0x7b8] sm:$0xff] }
 0x1bf   :  { %1488 = vmatpush.msra.mxu0 %v800_v3  ;;  %1511 = vmatpush.msra.mxu1 %v904_v5  ;;  %v961_v41 = vld [vmem:[#allocation10 + $0xe30] sm:$0xff] }
 0x1c0   :  { %1453 = vmatmul.f32.vlgmr.msrb.gmra.mxu2 %v2060_v48  ;;  %1540 = vmatpush.msra.mxu3 %v737_v6  ;;  %v561_v42 = vld [vmem:[#allocation10 + $0x1b0] sm:$0xff]  ;;  %v746_v6 = vld [vmem:[#allocation10 + $0x778] sm:$0xff] }
 0x1c1   :  { %1517 = vmatpush.msra.mxu2 %v633_v0  ;;  %1489 = vmatpush.msra.mxu0 %v792_v7  ;;  %v665_v43 = vld [vmem:[#allocation10 + $0x4f0] sm:$0xff] }
 0x1c2   :  { %1512 = vmatpush.msra.mxu1 %v896_v8  ;;  %1541 = vmatpush.msra.mxu3 %v729_v9  ;;  %v849_v44 = vld [vmem:[#allocation10 + $0xab0] sm:$0xff]  ;;  %v738_v9 = vld [vmem:[#allocation10 + $0x738] sm:$0xff] }
 0x1c3   :  { %1513 = vmatmul.f32.vlgmr.msra.gmra.mxu1 %v2063_v54  ;;  %1518 = vmatpush.msra.mxu2 %v625_v10  ;;  %v953_v45 = vld [vmem:[#allocation10 + $0xdf0] sm:$0xff]  ;;  %v634_v10 = vld [vmem:[#allocation10 + $0x3f8] sm:$0xff] }
 0x1c4   :  { %1577 = vmatpush.msrb.mxu1 %v1017_v11  ;;  %1490 = vmatpush.msra.mxu0 %v784_v12  ;;  %v553_v46 = vld [vmem:[#allocation10 + $0x170] sm:$0xff] }
 0x1c5   :  { %1519 = vmatpush.msra.mxu2 %v617_v13  ;;  %1542 = vmatpush.msra.mxu3 %v721_v14  ;;  %v657_v47 = vld [vmem:[#allocation10 + $0x4b0] sm:$0xff]  ;;  %v730_v13 = vld [vmem:[#allocation10 + $0x6f8] sm:$0xff] }
 0x1c6   :  { %1578 = vmatpush.msrb.mxu1 %v1009_v15  ;;  %1491 = vmatpush.msra.mxu0 %v776_v16  ;;  %v841_v49 = vld [vmem:[#allocation10 + $0xa70] sm:$0xff]  ;;  %v626_v14 = vld [vmem:[#allocation10 + $0x3b8] sm:$0xff]  ;;  %v2091_v15 = vpop.f32.mrf.mxu2 }
 0x1c7   :  { %1520 = vmatpush.msra.mxu2 %v609_v17  ;;  %1543 = vmatpush.msra.mxu3 %v713_v18  ;;  %v945_v50 = vld [vmem:[#allocation10 + $0xdb0] sm:$0xff]  ;;  %v1018_v16 = vld [vmem:[#allocation10 + $0xff8] sm:$0xff] }
 0x1c8   :  { %1579 = vmatpush.msrb.mxu1 %v1001_v19  ;;  %1492 = vmatpush.msra.mxu0 %v768_v20  ;;  %v545_v51 = vld [vmem:[#allocation10 + $0x130] sm:$0xff]  ;;  %v618_v18 = vld [vmem:[#allocation10 + $0x378] sm:$0xff] }
 0x1c9   :  { %1493 = vmatmul.f32.vlgmr.msra.gmra.mxu0 %v2067_v4  ;;  %1521 = vmatpush.msra.mxu2 %v601_v21  ;;  %v649_v52 = vld [vmem:[#allocation10 + $0x470] sm:$0xff]  ;;  %v722_v19 = vld [vmem:[#allocation10 + $0x6b8] sm:$0xff] }
 0x1ca   :  { %1544 = vmatpush.msra.mxu3 %v705_v22  ;;  %1557 = vmatpush.msrb.mxu0 %v889_v23  ;;  %v833_v53 = vld [vmem:[#allocation10 + $0xa30] sm:$0xff]  ;;  %v1010_v20 = vld [vmem:[#allocation10 + $0xfb8] sm:$0xff] }
 0x1cb   :  { %1580 = vmatpush.msrb.mxu1 %v993_v24  ;;  %1522 = vmatpush.msra.mxu2 %v593_v25  ;;  %v937_v55 = vld [vmem:[#allocation10 + $0xd70] sm:$0xff]  ;;  %v610_v22 = vld [vmem:[#allocation10 + $0x338] sm:$0xff]  ;;  %v2094_v24 = vpop.f32.mrf.mxu3 }
 0x1cc   :  { %1545 = vmatpush.msra.mxu3 %v697_v26  ;;  %1558 = vmatpush.msrb.mxu0 %v881_v27  ;;  %v537_v56 = vld [vmem:[#allocation10 + $0xf0] sm:$0xff]  ;;  %v714_v23 = vld [vmem:[#allocation10 + $0x678] sm:$0xff] }
 0x1cd   :  { %1581 = vmatpush.msrb.mxu1 %v985_v28  ;;  %1523 = vmatpush.msra.mxu2 %v585_v29  ;;  %v641_v57 = vld [vmem:[#allocation10 + $0x430] sm:$0xff]  ;;  %v1002_v25 = vld [vmem:[#allocation10 + $0xf78] sm:$0xff]  ;;  %v2096_v28 = vpop.f32.mrf.mxu0 }
 0x1ce   :  { %1546 = vmatpush.msra.mxu3 %v689_v30  ;;  %1559 = vmatpush.msrb.mxu0 %v873_v31  ;;  %v825_v58 = vld [vmem:[#allocation10 + $0x9f0] sm:$0xff]  ;;  %v602_v27 = vld [vmem:[#allocation10 + $0x2f8] sm:$0xff] }
 0x1cf   :  { %1582 = vmatpush.msrb.mxu1 %v977_v32  ;;  %1524 = vmatpush.msra.mxu2 %v577_v33  ;;  %v929_v59 = vld [vmem:[#allocation10 + $0xd30] sm:$0xff]  ;;  %v706_v29 = vld [vmem:[#allocation10 + $0x638] sm:$0xff]  ;;  %v2098_v33 = vpop.f32.mrf.mxu1 }
 0x1d0   :  { %1547 = vmatpush.msra.mxu3 %v681_v34  ;;  %1560 = vmatpush.msrb.mxu0 %v865_v35  ;;  %v529_v61 = vld [vmem:[#allocation10 + $0xb0] sm:$0xff]  ;;  %v890_v30 = vld [vmem:[#allocation10 + $0xbf8] sm:$0xff] }
 0x1d1   :  { %1583 = vmatpush.msrb.mxu1 %v969_v36  ;;  %1525 = vmatpush.msra.mxu2 %v569_v38  ;;  %v817_v62 = vld [vmem:[#allocation10 + $0x9b0] sm:$0xff]  ;;  %v994_v31 = vld [vmem:[#allocation10 + $0xf38] sm:$0xff] }
 0x1d2   :  { %1548 = vmatpush.msra.mxu3 %v673_v39  ;;  %1561 = vmatpush.msrb.mxu0 %v857_v40  ;;  %v921_v63 = vld [vmem:[#allocation10 + $0xcf0] sm:$0xff]  ;;  %v594_v32 = vld [vmem:[#allocation10 + $0x2b8] sm:$0xff]  ;;  %v1134_v39 = vpop.f32.mrf.mxu2 }
 0x1d3   :  { %1584 = vmatpush.msrb.mxu1 %v961_v41  ;;  %1526 = vmatpush.msra.mxu2 %v561_v42  ;;  %v521_v2 = vld [vmem:[#allocation10 + $0x70] sm:$0xff]  ;;  %v698_v34 = vld [vmem:[#allocation10 + $0x5f8] sm:$0xff] }
 0x1d4   :  { %1549 = vmatpush.msra.mxu3 %v665_v43  ;;  %1562 = vmatpush.msrb.mxu0 %v849_v44  ;;  %v809_v3 = vld [vmem:[#allocation10 + $0x970] sm:$0xff]  ;;  %v882_v35 = vld [vmem:[#allocation10 + $0xbb8] sm:$0xff] }
 0x1d5   :  { %1585 = vmatpush.msrb.mxu1 %v953_v45  ;;  %1527 = vmatpush.msra.mxu2 %v553_v46  ;;  %v913_v5 = vld [vmem:[#allocation10 + $0xcb0] sm:$0xff]  ;;  %v986_v36 = vld [vmem:[#allocation10 + $0xef8] sm:$0xff] }
 0x1d6   :  { %1550 = vmatpush.msra.mxu3 %v657_v47  ;;  %1563 = vmatpush.msrb.mxu0 %v841_v49  ;;  %v513_v0 = vld [vmem:[#allocation10 + $0x30] sm:$0xff]  ;;  %v586_v38 = vld [vmem:[#allocation10 + $0x278] sm:$0xff]  ;;  %v2101_v49 = vld [vmem:[#allocation12] sm:$0xff] }
 0x1d7   :  { %1586 = vmatpush.msrb.mxu1 %v945_v50  ;;  %1528 = vmatpush.msra.mxu2 %v545_v51  ;;  %v801_v7 = vld [vmem:[#allocation10 + $0x930] sm:$0xff]  ;;  %v690_v40 = vld [vmem:[#allocation10 + $0x5b8] sm:$0xff]  ;;  %v1154_v50 = vpop.f32.mrf.mxu3 }
 0x1d8   :  { %1551 = vmatpush.msra.mxu3 %v649_v52  ;;  %1564 = vmatpush.msrb.mxu0 %v833_v53  ;;  %v905_v8 = vld [vmem:[#allocation10 + $0xc70] sm:$0xff]  ;;  %v874_v41 = vld [vmem:[#allocation10 + $0xb78] sm:$0xff]  ;;  %v1022_v53 = vperm.slane %v2101_v49, 1 }
 0x1d9   :  { %1587 = vmatpush.msrb.mxu1 %v937_v55  ;;  %1529 = vmatpush.msra.mxu2 %v537_v56  ;;  %v793_v11 = vld [vmem:[#allocation10 + $0x8f0] sm:$0xff]  ;;  %v978_v42 = vld [vmem:[#allocation10 + $0xeb8] sm:$0xff] }
 0x1da   :  { %1552 = vmatpush.msra.mxu3 %v641_v57  ;;  %1565 = vmatpush.msrb.mxu0 %v825_v58  ;;  %v897_v12 = vld [vmem:[#allocation10 + $0xc30] sm:$0xff]  ;;  %v578_v43 = vld [vmem:[#allocation10 + $0x238] sm:$0xff]  ;;  %v1174_v57 = vpop.f32.mrf.mxu0 }
 0x1db   :  { %1588 = vmatpush.msrb.mxu1 %v929_v59  ;;  %1553 = vmatmul.f32.vlgmr.msra.gmra.mxu3 %v2057_v37  ;;  %v785_v17 = vld [vmem:[#allocation10 + $0x8b0] sm:$0xff]  ;;  %v682_v44 = vld [vmem:[#allocation10 + $0x578] sm:$0xff] }
 0x1dc   :  { %1617 = vmatpush.msrb.mxu3 %v762_v60  ;;  %1530 = vmatpush.msra.mxu2 %v529_v61  ;;  %v777_v21 = vld [vmem:[#allocation10 + $0x870] sm:$0xff]  ;;  %v866_v45 = vld [vmem:[#allocation10 + $0xb38] sm:$0xff]  ;;  %v1023_v60 = vperm.slane %v2101_v49, 2 }
 0x1dd   :  { %1566 = vmatpush.msrb.mxu0 %v817_v62  ;;  %1589 = vmatpush.msrb.mxu1 %v921_v63  ;;  %v769_v26 = vld [vmem:[#allocation10 + $0x830] sm:$0xff]  ;;  %v970_v46 = vld [vmem:[#allocation10 + $0xe78] sm:$0xff]  ;;  %v2105_v63 = vpop.f32.mrf.mxu1 }
 0x1de   :  { %1618 = vmatpush.msrb.mxu3 %v754_v1  ;;  %1531 = vmatpush.msra.mxu2 %v521_v2  ;;  %v570_v47 = vld [vmem:[#allocation10 + $0x1f8] sm:$0xff]  ;;  %v1214_v1 = vpop.f32.mrf.mxu2 }
 0x1df   :  { %1567 = vmatpush.msrb.mxu0 %v809_v3  ;;  %1590 = vmatpush.msrb.mxu1 %v913_v5  ;;  %v674_v51 = vld [vmem:[#allocation10 + $0x538] sm:$0xff]  ;;  %v1135_v5 = vadd.f32 %v1134_v39, %v1022_v53 }
 0x1e0   :  { %1619 = vmatpush.msrb.mxu3 %v746_v6  ;;  %1532 = vmatpush.msra.mxu2 %v513_v0  ;;  %v858_v52 = vld [vmem:[#allocation10 + $0xaf8] sm:$0xff] }
 0x1e1   :  { %1568 = vmatpush.msrb.mxu0 %v801_v7  ;;  %1591 = vmatpush.msrb.mxu1 %v905_v8  ;;  %v962_v55 = vld [vmem:[#allocation10 + $0xe38] sm:$0xff] }
 0x1e2   :  { %1533 = vmatmul.f32.vlgmr.msra.gmra.mxu2 %v2060_v48  ;;  %1620 = vmatpush.msrb.mxu3 %v738_v9  ;;  %v562_v56 = vld [vmem:[#allocation10 + $0x1b8] sm:$0xff]  ;;  %v1021_v9 = vperm.slane %v2101_v49, 0 }
 0x1e3   :  { %1597 = vmatpush.msrb.mxu2 %v634_v10  ;;  %1569 = vmatpush.msrb.mxu0 %v793_v11  ;;  %v666_v58 = vld [vmem:[#allocation10 + $0x4f8] sm:$0xff]  ;;  %v1215_v10 = vadd.f32 %v1214_v1, %v1023_v60 }
 0x1e4   :  { %1592 = vmatpush.msrb.mxu1 %v897_v12  ;;  %1621 = vmatpush.msrb.mxu3 %v730_v13  ;;  %v850_v59 = vld [vmem:[#allocation10 + $0xab8] sm:$0xff]  ;;  %v1234_v13 = vpop.f32.mrf.mxu3 }
 0x1e5   :  { %1593 = vmatmul.f32.vlgmr.msrb.gmra.mxu1 %v2063_v54  ;;  %1598 = vmatpush.msrb.mxu2 %v626_v14  ;;  %v954_v61 = vld [vmem:[#allocation10 + $0xdf8] sm:$0xff] }
 0x1e6   :  { %1657 = vmatpush.msra.mxu1 %v1018_v16  ;;  %1570 = vmatpush.msrb.mxu0 %v785_v17  ;;  %v554_v62 = vld [vmem:[#allocation10 + $0x178] sm:$0xff]  ;;  %v1155_v17 = vadd.f32 %v1154_v50, %v1135_v5  ;;  %v1027_v5 = vperm.slane %v2101_v49, 6 }
 0x1e7   :  { %1599 = vmatpush.msrb.mxu2 %v618_v18  ;;  %1622 = vmatpush.msrb.mxu3 %v722_v19  ;;  %v658_v2 = vld [vmem:[#allocation10 + $0x4b8] sm:$0xff]  ;;  %v1254_v19 = vpop.f32.mrf.mxu0 }
 0x1e8   :  { %1658 = vmatpush.msra.mxu1 %v1010_v20  ;;  %1571 = vmatpush.msrb.mxu0 %v777_v21  ;;  %v842_v3 = vld [vmem:[#allocation10 + $0xa78] sm:$0xff] }
 0x1e9   :  { %1600 = vmatpush.msrb.mxu2 %v610_v22  ;;  %1623 = vmatpush.msrb.mxu3 %v714_v23  ;;  %v946_v6 = vld [vmem:[#allocation10 + $0xdb8] sm:$0xff]  ;;  %v1055_v22 = vadd.f32 %v2091_v15, %v1021_v9  ;;  %v1235_v23 = vadd.f32 %v1234_v13, %v1215_v10 }
 0x1ea   :  { %1659 = vmatpush.msra.mxu1 %v1002_v25  ;;  %1572 = vmatpush.msrb.mxu0 %v769_v26  ;;  %v546_v0 = vld [vmem:[#allocation10 + $0x138] sm:$0xff]  ;;  %v1024_v26 = vperm.slane %v2101_v49, 3 }
 0x1eb   :  { %1573 = vmatmul.f32.vlgmr.msrb.gmra.mxu0 %v2067_v4  ;;  %1601 = vmatpush.msrb.mxu2 %v602_v27  ;;  %v650_v7 = vld [vmem:[#allocation10 + $0x478] sm:$0xff]  ;;  %v1274_v27 = vpop.f32.mrf.mxu1 }
 0x1ec   :  { %1624 = vmatpush.msrb.mxu3 %v706_v29  ;;  %1637 = vmatpush.msra.mxu0 %v890_v30  ;;  %v834_v8 = vld [vmem:[#allocation10 + $0xa38] sm:$0xff] }
 0x1ed   :  { %1660 = vmatpush.msra.mxu1 %v994_v31  ;;  %1602 = vmatpush.msrb.mxu2 %v594_v32  ;;  %v938_v11 = vld [vmem:[#allocation10 + $0xd78] sm:$0xff]  ;;  %v1175_v31 = vadd.f32 %v1174_v57, %v1155_v17 }
 0x1ee   :  { %1625 = vmatpush.msrb.mxu3 %v698_v34  ;;  %1638 = vmatpush.msra.mxu0 %v882_v35  ;;  %v538_v12 = vld [vmem:[#allocation10 + $0xf8] sm:$0xff] }
 0x1ef   :  { %1661 = vmatpush.msra.mxu1 %v986_v36  ;;  %1603 = vmatpush.msrb.mxu2 %v586_v38  ;;  %v642_v14 = vld [vmem:[#allocation10 + $0x438] sm:$0xff]  ;;  %v1075_v36 = vadd.f32 %v2094_v24, %v1055_v22  ;;  %v1255_v38 = vadd.f32 %v1254_v19, %v1235_v23 }
 0x1f0   :  { %1626 = vmatpush.msrb.mxu3 %v690_v40  ;;  %1639 = vmatpush.msra.mxu0 %v874_v41  ;;  %v826_v16 = vld [vmem:[#allocation10 + $0x9f8] sm:$0xff] }
 0x1f1   :  { %1662 = vmatpush.msra.mxu1 %v978_v42  ;;  %1604 = vmatpush.msrb.mxu2 %v578_v43  ;;  %v930_v18 = vld [vmem:[#allocation10 + $0xd38] sm:$0xff]  ;;  %v1195_v42 = vadd.f32 %v2105_v63, %v1175_v31  ;;  %v1095_v24 = vadd.f32 %v2096_v28, %v1075_v36 }
 0x1f2   :  { %1627 = vmatpush.msrb.mxu3 %v682_v44  ;;  %1640 = vmatpush.msra.mxu0 %v866_v45  ;;  %v530_v20 = vld [vmem:[#allocation10 + $0xb8] sm:$0xff] }
 0x1f3   :  { %1663 = vmatpush.msra.mxu1 %v970_v46  ;;  %1605 = vmatpush.msrb.mxu2 %v570_v47  ;;  %v818_v21 = vld [vmem:[#allocation10 + $0x9b8] sm:$0xff]  ;;  %v1275_v47 = vadd.f32 %v1274_v27, %v1255_v38  ;;  %v1685_v53 = vrot.slane %v1195_v42, 6 }
 0x1f4   :  { %1628 = vmatpush.msrb.mxu3 %v674_v51  ;;  %1641 = vmatpush.msra.mxu0 %v858_v52  ;;  %v922_v25 = vld [vmem:[#allocation10 + $0xcf8] sm:$0xff] }
 0x1f5   :  { %1664 = vmatpush.msra.mxu1 %v962_v55  ;;  %1606 = vmatpush.msrb.mxu2 %v562_v56  ;;  %v522_v29 = vld [vmem:[#allocation10 + $0x78] sm:$0xff]  ;;  %v1686_v57 = vrot.slane %v1275_v47, 4 }
 0x1f6   :  { %1629 = vmatpush.msrb.mxu3 %v666_v58  ;;  %1642 = vmatpush.msra.mxu0 %v850_v59  ;;  %v810_v30 = vld [vmem:[#allocation10 + $0x978] sm:$0xff] }
 0x1f7   :  { %1665 = vmatpush.msra.mxu1 %v954_v61  ;;  %1607 = vmatpush.msrb.mxu2 %v554_v62  ;;  %v914_v32 = vld [vmem:[#allocation10 + $0xcb8] sm:$0xff] }
 0x1f8   :  { %1630 = vmatpush.msrb.mxu3 %v658_v2  ;;  %1643 = vmatpush.msra.mxu0 %v842_v3  ;;  %v514_v34 = vld [vmem:[#allocation10 + $0x38] sm:$0xff]  ;;  %v1314_v41 = vpop.f32.mrf.mxu3  ;;  %v1026_v2 = vperm.slane %v2101_v49, 5 }
 0x1f9   :  { %1666 = vmatpush.msra.mxu1 %v946_v6  ;;  %1608 = vmatpush.msrb.mxu2 %v546_v0  ;;  %v802_v35 = vld [vmem:[#allocation10 + $0x938] sm:$0xff] }
 0x1fa   :  { %1631 = vmatpush.msrb.mxu3 %v650_v7  ;;  %1644 = vmatpush.msra.mxu0 %v834_v8  ;;  %v906_v39 = vld [vmem:[#allocation10 + $0xc78] sm:$0xff]  ;;  %v1025_v7 = vperm.slane %v2101_v49, 4 }
 0x1fb   :  { %1667 = vmatpush.msra.mxu1 %v938_v11  ;;  %1609 = vmatpush.msrb.mxu2 %v538_v12  ;;  %v898_v43 = vld [vmem:[#allocation10 + $0xc38] sm:$0xff] }
 0x1fc   :  { %1632 = vmatpush.msrb.mxu3 %v642_v14  ;;  %1645 = vmatpush.msra.mxu0 %v826_v16  ;;  %v786_v45 = vld [vmem:[#allocation10 + $0x8b8] sm:$0xff]  ;;  %v1354_v51 = vpop.f32.mrf.mxu1  ;;  %v1028_v14 = vperm.slane %v2101_v49, 7 }
 0x1fd   :  { %1668 = vmatpush.msra.mxu1 %v930_v18  ;;  %1633 = vmatmul.f32.vlgmr.msrb.gmra.mxu3 %v2057_v37  ;;  %v794_v37 = vld [vmem:[#allocation10 + $0x8f8] sm:$0xff] }
 0x1fe   :  { %1610 = vmatpush.msrb.mxu2 %v530_v20  ;;  %1646 = vmatpush.msra.mxu0 %v818_v21  ;;  %v778_v52 = vld [vmem:[#allocation10 + $0x878] sm:$0xff] }
 0x1ff   :  { %1669 = vmatpush.msra.mxu1 %v922_v25  ;;  %v1294_v15 = vpop.f32.mrf.mxu2  ;;  %v770_v56 = vld [vmem:[#allocation10 + $0x838] sm:$0xff] }
 0x200   :  { %1611 = vmatpush.msrb.mxu2 %v522_v29  ;;  %1647 = vmatpush.msra.mxu0 %v810_v30  ;;  %v1295_v40 = vadd.f32 %v1294_v15, %v1024_v26 }
 0x201   :  { %1670 = vmatpush.msra.mxu1 %v914_v32 }
 0x202   :  { %1612 = vmatpush.msrb.mxu2 %v514_v34  ;;  %1648 = vmatpush.msra.mxu0 %v802_v35  ;;  %v1315_v44 = vadd.f32 %v1314_v41, %v1295_v40  ;;  %v1334_v46 = vpop.f32.mrf.mxu0 }
 0x203   :  { %1671 = vmatpush.msra.mxu1 %v906_v39  ;;  %1613 = vmatmul.f32.vlgmr.msrb.gmra.mxu2 %v2060_v48  ;;  %v1115_v48 = vadd.f32 %v2098_v33, %v1095_v24 }
 0x204   :  { %1649 = vmatpush.msra.mxu0 %v794_v37  ;;  %v1335_v50 = vadd.f32 %v1334_v46, %v1315_v44 }
 0x205   :  { %1672 = vmatpush.msra.mxu1 %v898_v43  ;;  %v1692_v28 = vsel %vm1691_vm3, %v1115_v48, %v1685_v53 }
 0x206   :  { %1673 = vmatmul.f32.vlgmr.msra.gmra.mxu1 %v2063_v54  ;;  %1650 = vmatpush.msra.mxu0 %v786_v45  ;;  %v1355_v55 = vadd.f32 %v1354_v51, %v1335_v50 }
 0x208   :  { %1651 = vmatpush.msra.mxu0 %v778_v52  ;;  %v1687_v58 = vrot.slane %v1355_v55, 2 }
 0x20a   :  { %1652 = vmatpush.msra.mxu0 %v770_v56  ;;  %v1694_v59 = vsel %vm1693_vm4, %v1686_v57, %v1687_v58 }
 0x20b   :  { %1653 = vmatmul.f32.vlgmr.msra.gmra.mxu0 %v2067_v4  ;;  %v1696_v54 = vsel %vm1695_vm5, %v1692_v28, %v1694_v59 }
 0x20c   :  { %1702 = vst [vmem:[%s2142_s8] sm:$0xff] %v1696_v54 }
 0x21a   :  { %v1394_v61 = vpop.f32.mrf.mxu3 }
 0x21e   :  { %v1434_v62 = vpop.f32.mrf.mxu1 }
 0x221   :  { %v1374_v60 = vpop.f32.mrf.mxu2 }
 0x222   :  { %v1375_v12 = vadd.f32 %v1374_v60, %v1025_v7 }
 0x224   :  { %v1414_v33 = vpop.f32.mrf.mxu0  ;;  %v1395_v19 = vadd.f32 %v1394_v61, %v1375_v12 }
 0x226   :  { %v1415_v27 = vadd.f32 %v1414_v33, %v1395_v19 }
 0x228   :  { %v1435_v35 = vadd.f32 %v1434_v62, %v1415_v27 }
 0x23c   :  { %v1474_v1 = vpop.f32.mrf.mxu3 }
 0x240   :  { %v1514_v6 = vpop.f32.mrf.mxu1 }
 0x243   :  { %v1454_v63 = vpop.f32.mrf.mxu2 }
 0x244   :  { %v1455_v4 = vadd.f32 %v1454_v63, %v1026_v2 }
 0x246   :  { %v1494_v3 = vpop.f32.mrf.mxu0  ;;  %v1475_v10 = vadd.f32 %v1474_v1, %v1455_v4 }
 0x248   :  { %v1495_v17 = vadd.f32 %v1494_v3, %v1475_v10 }
 0x24a   :  { %v1515_v23 = vadd.f32 %v1514_v6, %v1495_v17 }
 0x24c   :  { %v1688_v32 = vrot.slane %v1515_v23, 6 }
 0x24e   :  { %v1697_v49 = vsel %vm1691_vm3, %v1435_v35, %v1688_v32 }
 0x25e   :  { %v1554_v9 = vpop.f32.mrf.mxu3 }
 0x262   :  { %v1594_v16 = vpop.f32.mrf.mxu1 }
 0x265   :  { %v1534_v0 = vpop.f32.mrf.mxu2 }
 0x266   :  { %v1535_v8 = vadd.f32 %v1534_v0, %v1027_v5 }
 0x268   :  { %v1574_v11 = vpop.f32.mrf.mxu0  ;;  %v1555_v13 = vadd.f32 %v1554_v9, %v1535_v8 }
 0x26a   :  { %v1575_v20 = vadd.f32 %v1574_v11, %v1555_v13 }
 0x26c   :  { %v1595_v29 = vadd.f32 %v1594_v16, %v1575_v20 }
 0x26e   :  { %v1689_v15 = vrot.slane %v1595_v29, 4 }
 0x280   :  { %v1634_v22 = vpop.f32.mrf.mxu3 }
 0x283   :  { %v1674_v31 = vpop.f32.mrf.mxu1 }
 0x286   :  { %v1614_v18 = vpop.f32.mrf.mxu2 }
 0x287   :  { %v1615_v21 = vadd.f32 %v1614_v18, %v1028_v14 }
 0x288   :  { %v1654_v26 = vpop.f32.mrf.mxu0 }
 0x289   :  { %v1635_v25 = vadd.f32 %v1634_v22, %v1615_v21 }
 0x28b   :  { %v1655_v30 = vadd.f32 %v1654_v26, %v1635_v25 }
 0x28d   :  { %v1675_v34 = vadd.f32 %v1674_v31, %v1655_v30 }
 0x28f   :  { %v1690_v36 = vrot.slane %v1675_v34, 2 }
 0x291   :  { %v1698_v38 = vsel %vm1693_vm4, %v1689_v15, %v1690_v36 }
 0x292   :  { %v1699_v39 = vsel %vm1695_vm5, %v1697_v49, %v1698_v38 }
 0x293   :  { %1703 = vst [vmem:[%s2142_s8 + $0x8] sm:$0xff] %v1699_v39 }
 0x294   :  { %1728 = vsyncpa [#allocation3], 1 }
 0x295   :  { %1729 = vsyncpa [#allocation5], 1 }
 0x296   :  { %1730 = vsyncpa [#allocation8], 1 }
 0x297   :  { %1731 = vsyncpa [#allocation11], 1 }
 0x298   :  { %1732 = vsyncpa [#allocation14], 1 }

</bundles_post_ra>
